<compile_context>
chip_gen: v7x
topology: tpu7x:2x2x1
jax: 0.10.0
libtpu: 0.0.40
codegen_flags: <defaults>
</compile_context>

<pallas_src>
import math
import functools
import numpy as np

import jax
import jax.numpy as jnp
from jax.experimental import pallas as pl
from jax.experimental.pallas import tpu as pltpu

# ---------------- small, module-consistent configuration ----------------
BATCH    = 2
SRC_DIM  = 32     # src_dim
SRC_LEN  = 24     # src_len
TGT_DIM  = 7      # tgt_dim
TGT_LEN  = 8      # tgt_len
HIDDEN   = 32     # hidden_size
NHEADS   = 4      # nheads  (head_dim = 8)
SEQ_LEN  = TGT_LEN + SRC_LEN          # total sequence length L = 32
HEAD_DIM = HIDDEN // NHEADS

# The packed (N, 32, 32) weight slab relies on this toy config where every
# "square" matrix dimension equals HIDDEN.
assert SRC_DIM == HIDDEN and SEQ_LEN == HIDDEN and HIDDEN % NHEADS == 0

# row indices inside the packed (N, 1, HIDDEN)-vector slab
(V_TGT, V_BA, V_G1, V_BE1, V_BOUT, V_G2, V_BE2, V_BF1,
 V_GFA, V_BFA, V_BF3, V_GO, V_BEO, V_BO) = range(14)
# indices inside the packed (N, 32, 32) matrix slab
W_WA, W_WF1, W_WO, W_POS = range(4)
W_VO = 4                               # per-head folded V @ Wout matrices start here


# ---------------- shared math helpers (kernel and reference) ----------------
def _layernorm(x, g, b, eps=1e-5):
    mu = jnp.mean(x, axis=-1, keepdims=True)
    var = jnp.mean(jnp.square(x - mu), axis=-1, keepdims=True)
    return (x - mu) * jax.lax.rsqrt(var + eps) * g + b


def _gelu_tanh(x):
    c = math.sqrt(2.0 / math.pi)
    return 0.5 * x * (1.0 + jnp.tanh(c * (x + 0.044715 * x * x * x)))


# ---------------- the Pallas kernel (one batch block per grid step) ----------------
def encoder_kernel(src_ref, mask_ref, wsq_ref, wqk_ref, wf2_ref, wf3_ref,
                   v32_ref, v128_ref, bqk_ref, out_ref, *, tgt_len, nheads):
    b_blk, L, src_dim = src_ref.shape          # src is host-padded to length L
    H = wsq_ref.shape[2]
    hd = H // nheads
    M = b_blk * L                              # batch rows folded into matmul M
    Mt = b_blk * tgt_len                       # target rows only
    scale = 1.0 / math.sqrt(hd)

    # ---- unpack packed slabs (leading-dim indexing is free) ----
    wa   = wsq_ref[W_WA]                       # (src_dim, H)
    wf1  = wsq_ref[W_WF1]                      # (H, H)
    wo   = wsq_ref[W_WO]                       # (H, H) lane-padded output head
    pos  = wsq_ref[W_POS]                      # (L, H)
    tgt_emb = v32_ref[V_TGT]
    ba      = v32_ref[V_BA]
    g1, be1 = v32_ref[V_G1], v32_ref[V_BE1]
    bout    = v32_ref[V_BOUT]                  # includes folded v-bias @ Wout
    g2, be2 = v32_ref[V_G2], v32_ref[V_BE2]
    bf1     = v32_ref[V_BF1]
    gfa, bfa = v32_ref[V_GFA], v32_ref[V_BFA]
    bf3     = v32_ref[V_BF3]
    go, beo = v32_ref[V_GO], v32_ref[V_BEO]
    bo      = v32_ref[V_BO]                    # lane-padded output-head bias
    bf2, gfb, bfb = v128_ref[0], v128_ref[1], v128_ref[2]

    # ---- adapter + [tgt_emb | src_emb] + positional embedding ----
    src2 = src_ref[...].reshape(M, src_dim)
    src_emb = jnp.dot(src2, wa, preferred_element_type=jnp.float32) + ba
    src_emb3 = src_emb.reshape(b_blk, L, H)
    pos_idx = jax.lax.broadcasted_iota(jnp.int32, (b_blk, L, H), 1)
    tgt3 = jnp.broadcast_to(tgt_emb[None], (b_blk, L, H))
    x3 = jnp.where(pos_idx < tgt_len, tgt3, src_emb3) + pos[None]
    x = x3.reshape(M, H)                       # (M, H) row-stacked activations

    # ---- multi-head self-attention (pre-LN) with key_padding_mask ----
    # Full rows are only needed for K and the folded V@Wout path; queries and
    # everything after the attention residual use just the target rows.
    h1 = _layernorm(x, g1, be1)                              # (M, H)
    h1t = h1.reshape(b_blk, L, H)[:, :tgt_len, :].reshape(Mt, H)
    xt  = x3[:, :tgt_len, :].reshape(Mt, H)                  # residual base
    mask_add = mask_ref[...]                                 # (b_blk, 1, L)

    attn = None
    for h in range(nheads):
        q = jnp.dot(h1t, wqk_ref[h], preferred_element_type=jnp.float32) + bqk_ref[h]
        k = jnp.dot(h1, wqk_ref[nheads + h],
                    preferred_element_type=jnp.float32) + bqk_ref[nheads + h]
        vo = jnp.dot(h1, wsq_ref[W_VO + h], preferred_element_type=jnp.float32)
        q3 = q.reshape(b_blk, tgt_len, hd)
        k3 = k.reshape(b_blk, L, hd)
        vo3 = vo.reshape(b_blk, L, H)
        s = jnp.einsum("bqd,bkd->bqk", q3, k3,
                       preferred_element_type=jnp.float32) * scale + mask_add
        s = s - jnp.max(s, axis=-1, keepdims=True)
        p = jnp.exp(s)
        p = p * pl.reciprocal(jnp.sum(p, axis=-1, keepdims=True), approx=True)
        contrib = jnp.einsum("bqk,bkh->bqh", p, vo3,
                             preferred_element_type=jnp.float32)
        attn = contrib if attn is None else attn + contrib
    x_t = xt + attn.reshape(Mt, H) + bout                    # (Mt, H)

    # ---- FFN (row-wise => target rows only):
    #      Linear -> LN -> GELU(tanh) -> Linear -> LN -> GELU(tanh) -> Linear ----
    h2 = _layernorm(x_t, g2, be2)
    y = jnp.dot(h2, wf1, preferred_element_type=jnp.float32) + bf1
    y = _gelu_tanh(_layernorm(y, gfa, bfa))
    y = jnp.dot(y, wf2_ref[...], preferred_element_type=jnp.float32) + bf2
    y = _gelu_tanh(_layernorm(y, gfb, bfb))
    y = jnp.dot(y, wf3_ref[...], preferred_element_type=jnp.float32) + bf3
    x_t = x_t + y

    # ---- output head: LN -> Linear(lane-padded) -> Tanh ----
    ho = _layernorm(x_t, go, beo)
    out = jnp.tanh(jnp.dot(ho, wo, preferred_element_type=jnp.float32) + bo)
    out_ref[...] = out.reshape(b_blk, tgt_len, H)


# ---------------- host-side packing ----------------
def pack_params(p):
    H, hd = HIDDEN, HEAD_DIM
    wo_pad = jnp.zeros((H, H), jnp.float32).at[:, :TGT_DIM].set(p["wo"])
    bo_pad = jnp.zeros((1, H), jnp.float32).at[:, :TGT_DIM].set(p["bo"])
    # fold the attention v-bias into the residual bias (softmax rows sum to 1):
    #   (p @ (v + b_v)) @ Wout + bout == p@v@Wout + (bout + b_v@Wout)
    b_v = p["bin"][:, 2 * H:]
    bout_eff = p["bout"] + b_v @ p["wout"]

    wq, wk, wv = p["win"][:, :H], p["win"][:, H:2 * H], p["win"][:, 2 * H:]
    heads = lambda w: [w[:, h * hd:(h + 1) * hd] for h in range(NHEADS)]
    # fold per-head V projection with the matching rows of Wout -> (H, H)
    wvo = [wv[:, h * hd:(h + 1) * hd] @ p["wout"][h * hd:(h + 1) * hd, :]
           for h in range(NHEADS)]

    w_sq = jnp.stack([p["wa"], p["wf1"], wo_pad, p["pos_emb"]] + wvo, axis=0)
    w_qk = jnp.stack(heads(wq) + heads(wk), axis=0)                    # (2*nh, H, hd)

    bq, bk = p["bin"][:, :H], p["bin"][:, H:2 * H]
    bheads = lambda b: [b[:, h * hd:(h + 1) * hd] for h in range(NHEADS)]
    b_qk = jnp.stack(bheads(bq) + bheads(bk), axis=0)                  # (2*nh, 1, hd)

    vec32 = jnp.stack([p["tgt_emb"], p["ba"], p["g1"], p["be1"], bout_eff,
                       p["g2"], p["be2"], p["bf1"], p["gfa"], p["bfa"],
                       p["bf3"], p["go"], p["beo"], bo_pad], axis=0)   # (14, 1, H)
    vec128 = jnp.stack([p["bf2"], p["gfb"], p["bfb"]], axis=0)         # (3, 1, 4H)
    return (w_sq, w_qk, p["wf2"], p["wf3"], vec32, vec128, b_qk)


def _build_mask_add(mask_bool, b_pad):
    """(B, src_len) bool -> (b_pad, 1, L) float additive mask (key_padding_mask)."""
    b = mask_bool.shape[0]
    tgt_mask = jnp.zeros((b, TGT_LEN), jnp.bool_)
    full = jnp.concatenate([tgt_mask, mask_bool], axis=1)              # (B, L)
    if b_pad > b:
        full = jnp.concatenate(
            [full, jnp.zeros((b_pad - b, SEQ_LEN), jnp.bool_)], axis=0)
    return jnp.where(full, -1e30, 0.0).astype(jnp.float32).reshape(b_pad, 1, SEQ_LEN)


# ---------------- wrapper ----------------
def encoder_forward(src, mask_bool, params, *, b_blk=None):
    b = src.shape[0]
    if b_blk is None:
        b_blk = min(b, 4)          # fold batch rows into matmul M (M = b_blk * L)
    b_pad = -(-b // b_blk) * b_blk

    # pad the source with tgt_len leading zero rows so the kernel works on one
    # (b_blk*L, src_dim) row slab; the tgt rows are overwritten in-kernel.
    src_full = jnp.zeros((b_pad, SEQ_LEN, SRC_DIM), jnp.float32)
    src_full = src_full.at[:b, TGT_LEN:, :].set(src)
    mask_add = _build_mask_add(mask_bool, b_pad)

    weights = pack_params(params)

    def _const_spec(arr):
        nd = arr.ndim
        return pl.BlockSpec(arr.shape, lambda i, _nd=nd: (0,) * _nd)

    in_specs = ([pl.BlockSpec((b_blk, SEQ_LEN, SRC_DIM), lambda i: (i, 0, 0)),
                 pl.BlockSpec((b_blk, 1, SEQ_LEN), lambda i: (i, 0, 0))]
                + [_const_spec(w) for w in weights])

    kernel = functools.partial(encoder_kernel, tgt_len=TGT_LEN, nheads=NHEADS)

    out = pl.pallas_call(
        kernel,
        out_shape=jax.ShapeDtypeStruct((b_pad, TGT_LEN, HIDDEN), jnp.float32),
        grid_spec=pltpu.PrefetchScalarGridSpec(
            num_scalar_prefetch=0,
            grid=(b_pad // b_blk,),
            in_specs=in_specs,
            out_specs=pl.BlockSpec((b_blk, TGT_LEN, HIDDEN), lambda i: (i, 0, 0)),
        ),
        compiler_params=pltpu.CompilerParams(dimension_semantics=("parallel",)),
    )(src_full, mask_add, *weights)
    # lane-dense output head is padded to HIDDEN columns; slice to tgt_dim here.
    return out[:b, :, :TGT_DIM]


# ---------------- deterministic parameter construction ----------------
def _sinusoidal_pos_emb(length, dim, max_positions=1000):
    # TODO(synk): exact UntrainablePositionalEmbedding formula not provided; using
    # the standard sinusoidal table (sin/cos halves) as a deterministic stand-in.
    half = dim // 2
    pos = np.arange(length, dtype=np.float64)[:, None]
    freqs = np.exp(-np.log(float(max_positions)) * np.arange(half, dtype=np.float64) / half)
    args = pos * freqs[None, :]
    return np.concatenate([np.sin(args), np.cos(args)], axis=-1).astype(np.float32)


def init_params(key):
    ks = jax.random.split(key, 32)
    H = HIDDEN

    def n(i, shape, std=0.02):
        return jax.random.normal(ks[i], shape, jnp.float32) * std

    p = {}
    p["wa"] = n(0, (SRC_DIM, H)); p["ba"] = n(1, (1, H))
    p["tgt_emb"] = n(2, (1, H))                               # torch.randn((1,1,H))*0.02
    p["pos_emb"] = jnp.asarray(_sinusoidal_pos_emb(SEQ_LEN, H) * 0.2, jnp.float32)
    p["g1"] = 1.0 + n(3, (1, H), 0.1);  p["be1"] = n(4, (1, H), 0.1)
    p["win"] = n(5, (H, 3 * H));        p["bin"] = n(6, (1, 3 * H))
    p["wout"] = n(7, (H, H));           p["bout"] = n(8, (1, H))
    p["g2"] = 1.0 + n(9, (1, H), 0.1);  p["be2"] = n(10, (1, H), 0.1)
    p["wf1"] = n(11, (H, H));           p["bf1"] = n(12, (1, H))
    p["gfa"] = 1.0 + n(13, (1, H), 0.1); p["bfa"] = n(14, (1, H), 0.1)
    p["wf2"] = n(15, (H, 4 * H));       p["bf2"] = n(16, (1, 4 * H))
    p["gfb"] = 1.0 + n(17, (1, 4 * H), 0.1); p["bfb"] = n(18, (1, 4 * H), 0.1)
    p["wf3"] = n(19, (4 * H, H));       p["bf3"] = n(20, (1, H))
    p["go"] = 1.0 + n(21, (1, H), 0.1); p["beo"] = n(22, (1, H), 0.1)
    p["wo"] = n(23, (H, TGT_DIM), 0.1); p["bo"] = n(24, (1, TGT_DIM), 0.1)
    return p


# ---------------- pure-JAX reference (for correctness check) ----------------
def ref_forward(src, mask_bool, p):
    b = src.shape[0]
    H, hd = HIDDEN, HEAD_DIM
    mask_add = _build_mask_add(mask_bool, b)                           # (B,1,L)

    src_emb = jnp.einsum("bsd,dh->bsh", src, p["wa"]) + p["ba"]
    tgt = jnp.broadcast_to(p["tgt_emb"][None], (b, TGT_LEN, H))
    x = jnp.concatenate([tgt, src_emb], axis=1) + p["pos_emb"][None]

    h = _layernorm(x, p["g1"], p["be1"])
    qkv = jnp.einsum("blh,hk->blk", h, p["win"]) + p["bin"]
    q = qkv[..., :H].reshape(b, SEQ_LEN, NHEADS, hd).transpose(0, 2, 1, 3)
    k = qkv[..., H:2 * H].reshape(b, SEQ_LEN, NHEADS, hd).transpose(0, 2, 1, 3)
    v = qkv[..., 2 * H:].reshape(b, SEQ_LEN, NHEADS, hd).transpose(0, 2, 1, 3)
    s = jnp.einsum("bhqd,bhkd->bhqk", q, k) / math.sqrt(hd) + mask_add[:, None, :, :]
    a = jax.nn.softmax(s, axis=-1)
    o = jnp.einsum("bhqk,bhkd->bhqd", a, v).transpose(0, 2, 1, 3).reshape(b, SEQ_LEN, H)
    x = x + jnp.einsum("blh,hk->blk", o, p["wout"]) + p["bout"]

    h = _layernorm(x, p["g2"], p["be2"])
    y = _gelu_tanh(_layernorm(h @ p["wf1"] + p["bf1"], p["gfa"], p["bfa"]))
    y = _gelu_tanh(_layernorm(y @ p["wf2"] + p["bf2"], p["gfb"], p["bfb"]))
    y = y @ p["wf3"] + p["bf3"]
    x = x + y

    xt = x[:, :TGT_LEN]
    return jnp.tanh(_layernorm(xt, p["go"], p["beo"]) @ p["wo"] + p["bo"])


# ---------------- main ----------------
if __name__ == "__main__":
    key = jax.random.PRNGKey(0)
    kp, ksrc = jax.random.split(key, 2)
    params = init_params(kp)

    src = jax.random.normal(ksrc, (BATCH, SRC_LEN, SRC_DIM), jnp.float32)
    # key_padding_mask: last 5 source positions of batch element 1 are padding
    mask = jnp.zeros((BATCH, SRC_LEN), jnp.bool_).at[1, SRC_LEN - 5:].set(True)

    out = encoder_forward(src, mask, params)
    out = jax.block_until_ready(out)

    ref = jax.block_until_ready(ref_forward(src, mask, params))

    assert out.shape == (BATCH, TGT_LEN, TGT_DIM), out.shape
    np.testing.assert_allclose(np.asarray(out), np.asarray(ref), atol=2e-2, rtol=2e-2)
    print("KERNEL_OK")
</pallas_src>

<mosaic_0001>
module attributes {stable_mosaic.version = 11 : i64} {
  func.func @encoder_kernel(%arg0: i32, %arg1: memref<2x32x32xf32, #tpu.memory_space<vmem>>, %arg2: memref<2x1x32xf32, #tpu.memory_space<vmem>>, %arg3: memref<8x32x32xf32, #tpu.memory_space<vmem>>, %arg4: memref<8x32x8xf32, #tpu.memory_space<vmem>>, %arg5: memref<32x128xf32, #tpu.memory_space<vmem>>, %arg6: memref<128x32xf32, #tpu.memory_space<vmem>>, %arg7: memref<14x1x32xf32, #tpu.memory_space<vmem>>, %arg8: memref<3x1x128xf32, #tpu.memory_space<vmem>>, %arg9: memref<8x1x8xf32, #tpu.memory_space<vmem>>, %arg10: memref<2x8x32xf32, #tpu.memory_space<vmem>>) attributes {dimension_semantics = [#tpu.dimension_semantics<parallel>], iteration_bounds = array<i64: 1>, scalar_prefetch = 0 : i64, scratch_operands = 0 : i64, tpu.core_type = #tpu.core_type<tc>, window_params = [{transform_indices = @transform_0, window_bounds = array<i64: 2, 32, 32>}, {transform_indices = @transform_1, window_bounds = array<i64: 2, 1, 32>}, {pipeline_mode = #tpu.pipeline_mode<synchronous>, transform_indices = @transform_2, window_bounds = array<i64: 8, 32, 32>}, {pipeline_mode = #tpu.pipeline_mode<synchronous>, transform_indices = @transform_3, window_bounds = array<i64: 8, 32, 8>}, {pipeline_mode = #tpu.pipeline_mode<synchronous>, transform_indices = @transform_4, window_bounds = array<i64: 32, 128>}, {pipeline_mode = #tpu.pipeline_mode<synchronous>, transform_indices = @transform_5, window_bounds = array<i64: 128, 32>}, {pipeline_mode = #tpu.pipeline_mode<synchronous>, transform_indices = @transform_6, window_bounds = array<i64: 14, 1, 32>}, {pipeline_mode = #tpu.pipeline_mode<synchronous>, transform_indices = @transform_7, window_bounds = array<i64: 3, 1, 128>}, {pipeline_mode = #tpu.pipeline_mode<synchronous>, transform_indices = @transform_8, window_bounds = array<i64: 8, 1, 8>}, {transform_indices = @transform_9, window_bounds = array<i64: 2, 8, 32>}]} {
    %c0 = arith.constant 0 : index
    %c0_0 = arith.constant 0 : index
    %c0_1 = arith.constant 0 : index
    %0 = vector.load %arg3[%c0, %c0_0, %c0_1] : memref<8x32x32xf32, #tpu.memory_space<vmem>>, vector<1x32x32xf32>
    %1 = vector.shape_cast %0 : vector<1x32x32xf32> to vector<32x32xf32>
    %c1 = arith.constant 1 : index
    %c0_2 = arith.constant 0 : index
    %c0_3 = arith.constant 0 : index
    %2 = vector.load %arg3[%c1, %c0_2, %c0_3] : memref<8x32x32xf32, #tpu.memory_space<vmem>>, vector<1x32x32xf32>
    %3 = vector.shape_cast %2 : vector<1x32x32xf32> to vector<32x32xf32>
    %c2 = arith.constant 2 : index
    %c0_4 = arith.constant 0 : index
    %c0_5 = arith.constant 0 : index
    %4 = vector.load %arg3[%c2, %c0_4, %c0_5] : memref<8x32x32xf32, #tpu.memory_space<vmem>>, vector<1x32x32xf32>
    %5 = vector.shape_cast %4 : vector<1x32x32xf32> to vector<32x32xf32>
    %c3 = arith.constant 3 : index
    %c0_6 = arith.constant 0 : index
    %c0_7 = arith.constant 0 : index
    %6 = vector.load %arg3[%c3, %c0_6, %c0_7] : memref<8x32x32xf32, #tpu.memory_space<vmem>>, vector<1x32x32xf32>
    %7 = vector.shape_cast %6 : vector<1x32x32xf32> to vector<32x32xf32>
    %c0_8 = arith.constant 0 : index
    %c0_9 = arith.constant 0 : index
    %c0_10 = arith.constant 0 : index
    %8 = vector.load %arg7[%c0_8, %c0_9, %c0_10] : memref<14x1x32xf32, #tpu.memory_space<vmem>>, vector<1x1x32xf32>
    %9 = vector.shape_cast %8 : vector<1x1x32xf32> to vector<1x32xf32>
    %c1_11 = arith.constant 1 : index
    %c0_12 = arith.constant 0 : index
    %c0_13 = arith.constant 0 : index
    %10 = vector.load %arg7[%c1_11, %c0_12, %c0_13] : memref<14x1x32xf32, #tpu.memory_space<vmem>>, vector<1x1x32xf32>
    %11 = vector.shape_cast %10 : vector<1x1x32xf32> to vector<1x32xf32>
    %c2_14 = arith.constant 2 : index
    %c0_15 = arith.constant 0 : index
    %c0_16 = arith.constant 0 : index
    %12 = vector.load %arg7[%c2_14, %c0_15, %c0_16] : memref<14x1x32xf32, #tpu.memory_space<vmem>>, vector<1x1x32xf32>
    %13 = vector.shape_cast %12 : vector<1x1x32xf32> to vector<1x32xf32>
    %c3_17 = arith.constant 3 : index
    %c0_18 = arith.constant 0 : index
    %c0_19 = arith.constant 0 : index
    %14 = vector.load %arg7[%c3_17, %c0_18, %c0_19] : memref<14x1x32xf32, #tpu.memory_space<vmem>>, vector<1x1x32xf32>
    %15 = vector.shape_cast %14 : vector<1x1x32xf32> to vector<1x32xf32>
    %c4 = arith.constant 4 : index
    %c0_20 = arith.constant 0 : index
    %c0_21 = arith.constant 0 : index
    %16 = vector.load %arg7[%c4, %c0_20, %c0_21] : memref<14x1x32xf32, #tpu.memory_space<vmem>>, vector<1x1x32xf32>
    %17 = vector.shape_cast %16 : vector<1x1x32xf32> to vector<1x32xf32>
    %c5 = arith.constant 5 : index
    %c0_22 = arith.constant 0 : index
    %c0_23 = arith.constant 0 : index
    %18 = vector.load %arg7[%c5, %c0_22, %c0_23] : memref<14x1x32xf32, #tpu.memory_space<vmem>>, vector<1x1x32xf32>
    %19 = vector.shape_cast %18 : vector<1x1x32xf32> to vector<1x32xf32>
    %c6 = arith.constant 6 : index
    %c0_24 = arith.constant 0 : index
    %c0_25 = arith.constant 0 : index
    %20 = vector.load %arg7[%c6, %c0_24, %c0_25] : memref<14x1x32xf32, #tpu.memory_space<vmem>>, vector<1x1x32xf32>
    %21 = vector.shape_cast %20 : vector<1x1x32xf32> to vector<1x32xf32>
    %c7 = arith.constant 7 : index
    %c0_26 = arith.constant 0 : index
    %c0_27 = arith.constant 0 : index
    %22 = vector.load %arg7[%c7, %c0_26, %c0_27] : memref<14x1x32xf32, #tpu.memory_space<vmem>>, vector<1x1x32xf32>
    %23 = vector.shape_cast %22 : vector<1x1x32xf32> to vector<1x32xf32>
    %c8 = arith.constant 8 : index
    %c0_28 = arith.constant 0 : index
    %c0_29 = arith.constant 0 : index
    %24 = vector.load %arg7[%c8, %c0_28, %c0_29] : memref<14x1x32xf32, #tpu.memory_space<vmem>>, vector<1x1x32xf32>
    %25 = vector.shape_cast %24 : vector<1x1x32xf32> to vector<1x32xf32>
    %c9 = arith.constant 9 : index
    %c0_30 = arith.constant 0 : index
    %c0_31 = arith.constant 0 : index
    %26 = vector.load %arg7[%c9, %c0_30, %c0_31] : memref<14x1x32xf32, #tpu.memory_space<vmem>>, vector<1x1x32xf32>
    %27 = vector.shape_cast %26 : vector<1x1x32xf32> to vector<1x32xf32>
    %c10 = arith.constant 10 : index
    %c0_32 = arith.constant 0 : index
    %c0_33 = arith.constant 0 : index
    %28 = vector.load %arg7[%c10, %c0_32, %c0_33] : memref<14x1x32xf32, #tpu.memory_space<vmem>>, vector<1x1x32xf32>
    %29 = vector.shape_cast %28 : vector<1x1x32xf32> to vector<1x32xf32>
    %c11 = arith.constant 11 : index
    %c0_34 = arith.constant 0 : index
    %c0_35 = arith.constant 0 : index
    %30 = vector.load %arg7[%c11, %c0_34, %c0_35] : memref<14x1x32xf32, #tpu.memory_space<vmem>>, vector<1x1x32xf32>
    %31 = vector.shape_cast %30 : vector<1x1x32xf32> to vector<1x32xf32>
    %c12 = arith.constant 12 : index
    %c0_36 = arith.constant 0 : index
    %c0_37 = arith.constant 0 : index
    %32 = vector.load %arg7[%c12, %c0_36, %c0_37] : memref<14x1x32xf32, #tpu.memory_space<vmem>>, vector<1x1x32xf32>
    %33 = vector.shape_cast %32 : vector<1x1x32xf32> to vector<1x32xf32>
    %c13 = arith.constant 13 : index
    %c0_38 = arith.constant 0 : index
    %c0_39 = arith.constant 0 : index
    %34 = vector.load %arg7[%c13, %c0_38, %c0_39] : memref<14x1x32xf32, #tpu.memory_space<vmem>>, vector<1x1x32xf32>
    %35 = vector.shape_cast %34 : vector<1x1x32xf32> to vector<1x32xf32>
    %c0_40 = arith.constant 0 : index
    %c0_41 = arith.constant 0 : index
    %c0_42 = arith.constant 0 : index
    %36 = vector.load %arg8[%c0_40, %c0_41, %c0_42] : memref<3x1x128xf32, #tpu.memory_space<vmem>>, vector<1x1x128xf32>
    %37 = vector.shape_cast %36 : vector<1x1x128xf32> to vector<1x128xf32>
    %c1_43 = arith.constant 1 : index
    %c0_44 = arith.constant 0 : index
    %c0_45 = arith.constant 0 : index
    %38 = vector.load %arg8[%c1_43, %c0_44, %c0_45] : memref<3x1x128xf32, #tpu.memory_space<vmem>>, vector<1x1x128xf32>
    %39 = vector.shape_cast %38 : vector<1x1x128xf32> to vector<1x128xf32>
    %c2_46 = arith.constant 2 : index
    %c0_47 = arith.constant 0 : index
    %c0_48 = arith.constant 0 : index
    %40 = vector.load %arg8[%c2_46, %c0_47, %c0_48] : memref<3x1x128xf32, #tpu.memory_space<vmem>>, vector<1x1x128xf32>
    %41 = vector.shape_cast %40 : vector<1x1x128xf32> to vector<1x128xf32>
    %c0_49 = arith.constant 0 : index
    %c0_50 = arith.constant 0 : index
    %c0_51 = arith.constant 0 : index
    %42 = vector.load %arg1[%c0_49, %c0_50, %c0_51] : memref<2x32x32xf32, #tpu.memory_space<vmem>>, vector<2x32x32xf32>
    %43 = vector.shape_cast %42 : vector<2x32x32xf32> to vector<64x32xf32>
    %cst = arith.constant dense<0.000000e+00> : vector<64x32xf32>
    %44 = tpu.matmul %43, %1, %cst {dimension_numbers = #tpu.dot_dimension_numbers<[1], [0], [0], [1], [0, 0, 1, 1], [], []>} : vector<64x32xf32>, vector<32x32xf32>, vector<64x32xf32> -> vector<64x32xf32>
    %45 = vector.broadcast %11 : vector<1x32xf32> to vector<64x32xf32>
    %46 = arith.addf %44, %45 : vector<64x32xf32>
    %47 = vector.shape_cast %46 : vector<64x32xf32> to vector<2x32x32xf32>
    %48 = tpu.iota {dimensions = array<i32: 1>} : vector<2x32x32xi32>
    %49 = vector.shape_cast %9 : vector<1x32xf32> to vector<1x1x32xf32>
    %50 = vector.shape_cast %49 : vector<1x1x32xf32> to vector<1x1x32xf32>
    %51 = vector.broadcast %50 : vector<1x1x32xf32> to vector<2x32x32xf32>
    %c8_i32 = arith.constant 8 : i32
    %52 = vector.broadcast %c8_i32 : i32 to vector<2x32x32xi32>
    %53 = arith.cmpi slt, %48, %52 : vector<2x32x32xi32>
    %54 = arith.select %53, %51, %47 : vector<2x32x32xi1>, vector<2x32x32xf32>
    %55 = vector.shape_cast %7 : vector<32x32xf32> to vector<1x32x32xf32>
    %56 = vector.broadcast %55 : vector<1x32x32xf32> to vector<2x32x32xf32>
    %57 = arith.addf %54, %56 : vector<2x32x32xf32>
    %58 = vector.shape_cast %57 : vector<2x32x32xf32> to vector<64x32xf32>
    %cst_52 = arith.constant dense<0.000000e+00> : vector<64xf32>
    %59 = vector.multi_reduction <add>, %58, %cst_52 [1] : vector<64x32xf32> to vector<64xf32>
    %60 = vector.shape_cast %59 : vector<64xf32> to vector<64x1xf32>
    %cst_53 = arith.constant 3.200000e+01 : f32
    %61 = vector.broadcast %cst_53 : f32 to vector<64x1xf32>
    %62 = arith.divf %60, %61 : vector<64x1xf32>
    %63 = vector.broadcast %62 : vector<64x1xf32> to vector<64x32xf32>
    %64 = arith.subf %58, %63 : vector<64x32xf32>
    %65 = arith.mulf %64, %64 : vector<64x32xf32>
    %cst_54 = arith.constant dense<0.000000e+00> : vector<64xf32>
    %66 = vector.multi_reduction <add>, %65, %cst_54 [1] : vector<64x32xf32> to vector<64xf32>
    %67 = vector.shape_cast %66 : vector<64xf32> to vector<64x1xf32>
    %cst_55 = arith.constant 3.200000e+01 : f32
    %68 = vector.broadcast %cst_55 : f32 to vector<64x1xf32>
    %69 = arith.divf %67, %68 : vector<64x1xf32>
    %70 = vector.broadcast %62 : vector<64x1xf32> to vector<64x32xf32>
    %71 = arith.subf %58, %70 : vector<64x32xf32>
    %cst_56 = arith.constant 9.99999974E-6 : f32
    %72 = vector.broadcast %cst_56 : f32 to vector<64x1xf32>
    %73 = arith.addf %69, %72 : vector<64x1xf32>
    %74 = math.rsqrt %73 : vector<64x1xf32>
    %75 = vector.broadcast %74 : vector<64x1xf32> to vector<64x32xf32>
    %76 = arith.mulf %71, %75 : vector<64x32xf32>
    %77 = vector.broadcast %13 : vector<1x32xf32> to vector<64x32xf32>
    %78 = arith.mulf %76, %77 : vector<64x32xf32>
    %79 = vector.broadcast %15 : vector<1x32xf32> to vector<64x32xf32>
    %80 = arith.addf %78, %79 : vector<64x32xf32>
    %81 = vector.shape_cast %80 : vector<64x32xf32> to vector<2x32x32xf32>
    %82 = vector.extract_strided_slice %81 {offsets = [0, 0, 0], sizes = [2, 8, 32], strides = [1, 1, 1]} : vector<2x32x32xf32> to vector<2x8x32xf32>
    %83 = vector.shape_cast %82 : vector<2x8x32xf32> to vector<16x32xf32>
    %84 = vector.extract_strided_slice %57 {offsets = [0, 0, 0], sizes = [2, 8, 32], strides = [1, 1, 1]} : vector<2x32x32xf32> to vector<2x8x32xf32>
    %85 = vector.shape_cast %84 : vector<2x8x32xf32> to vector<16x32xf32>
    %c0_57 = arith.constant 0 : index
    %c0_58 = arith.constant 0 : index
    %c0_59 = arith.constant 0 : index
    %86 = vector.load %arg2[%c0_57, %c0_58, %c0_59] : memref<2x1x32xf32, #tpu.memory_space<vmem>>, vector<2x1x32xf32>
    %c0_60 = arith.constant 0 : index
    %c0_61 = arith.constant 0 : index
    %c0_62 = arith.constant 0 : index
    %87 = vector.load %arg4[%c0_60, %c0_61, %c0_62] : memref<8x32x8xf32, #tpu.memory_space<vmem>>, vector<1x32x8xf32>
    %88 = vector.shape_cast %87 : vector<1x32x8xf32> to vector<32x8xf32>
    %cst_63 = arith.constant dense<0.000000e+00> : vector<16x8xf32>
    %89 = tpu.matmul %83, %88, %cst_63 {dimension_numbers = #tpu.dot_dimension_numbers<[1], [0], [0], [1], [0, 0, 1, 1], [], []>} : vector<16x32xf32>, vector<32x8xf32>, vector<16x8xf32> -> vector<16x8xf32>
    %c0_64 = arith.constant 0 : index
    %c0_65 = arith.constant 0 : index
    %c0_66 = arith.constant 0 : index
    %90 = vector.load %arg9[%c0_64, %c0_65, %c0_66] : memref<8x1x8xf32, #tpu.memory_space<vmem>>, vector<1x1x8xf32>
    %91 = vector.shape_cast %90 : vector<1x1x8xf32> to vector<1x8xf32>
    %92 = vector.broadcast %91 : vector<1x8xf32> to vector<16x8xf32>
    %93 = arith.addf %89, %92 : vector<16x8xf32>
    %c4_67 = arith.constant 4 : index
    %c0_68 = arith.constant 0 : index
    %c0_69 = arith.constant 0 : index
    %94 = vector.load %arg4[%c4_67, %c0_68, %c0_69] : memref<8x32x8xf32, #tpu.memory_space<vmem>>, vector<1x32x8xf32>
    %95 = vector.shape_cast %94 : vector<1x32x8xf32> to vector<32x8xf32>
    %cst_70 = arith.constant dense<0.000000e+00> : vector<64x8xf32>
    %96 = tpu.matmul %80, %95, %cst_70 {dimension_numbers = #tpu.dot_dimension_numbers<[1], [0], [0], [1], [0, 0, 1, 1], [], []>} : vector<64x32xf32>, vector<32x8xf32>, vector<64x8xf32> -> vector<64x8xf32>
    %c4_71 = arith.constant 4 : index
    %c0_72 = arith.constant 0 : index
    %c0_73 = arith.constant 0 : index
    %97 = vector.load %arg9[%c4_71, %c0_72, %c0_73] : memref<8x1x8xf32, #tpu.memory_space<vmem>>, vector<1x1x8xf32>
    %98 = vector.shape_cast %97 : vector<1x1x8xf32> to vector<1x8xf32>
    %99 = vector.broadcast %98 : vector<1x8xf32> to vector<64x8xf32>
    %100 = arith.addf %96, %99 : vector<64x8xf32>
    %c4_74 = arith.constant 4 : index
    %c0_75 = arith.constant 0 : index
    %c0_76 = arith.constant 0 : index
    %101 = vector.load %arg3[%c4_74, %c0_75, %c0_76] : memref<8x32x32xf32, #tpu.memory_space<vmem>>, vector<1x32x32xf32>
    %102 = vector.shape_cast %101 : vector<1x32x32xf32> to vector<32x32xf32>
    %cst_77 = arith.constant dense<0.000000e+00> : vector<64x32xf32>
    %103 = tpu.matmul %80, %102, %cst_77 {dimension_numbers = #tpu.dot_dimension_numbers<[1], [0], [0], [1], [0, 0, 1, 1], [], []>} : vector<64x32xf32>, vector<32x32xf32>, vector<64x32xf32> -> vector<64x32xf32>
    %104 = vector.shape_cast %93 : vector<16x8xf32> to vector<2x8x8xf32>
    %105 = vector.shape_cast %100 : vector<64x8xf32> to vector<2x32x8xf32>
    %106 = vector.shape_cast %103 : vector<64x32xf32> to vector<2x32x32xf32>
    "tpu.trace_start"() <{level = 10 : i32, message = "bqd,bkd->bqk"}> : () -> ()
    %cst_78 = arith.constant dense<0.000000e+00> : vector<2x8x32xf32>
    %107 = tpu.matmul %104, %105, %cst_78 {dimension_numbers = #tpu.dot_dimension_numbers<[2], [2], [1], [1], [0, 0, 0, 1, 1, 1], [0], [0]>} : vector<2x8x8xf32>, vector<2x32x8xf32>, vector<2x8x32xf32> -> vector<2x8x32xf32>
    "tpu.trace_stop"() : () -> ()
    %cst_79 = arith.constant 0.353553385 : f32
    %108 = vector.broadcast %cst_79 : f32 to vector<2x8x32xf32>
    %109 = arith.mulf %107, %108 : vector<2x8x32xf32>
    %110 = vector.broadcast %86 : vector<2x1x32xf32> to vector<2x8x32xf32>
    %111 = arith.addf %109, %110 : vector<2x8x32xf32>
    %cst_80 = arith.constant dense<0xFF800000> : vector<2x8xf32>
    %112 = vector.multi_reduction <maximumf>, %111, %cst_80 [2] : vector<2x8x32xf32> to vector<2x8xf32>
    %113 = vector.shape_cast %112 : vector<2x8xf32> to vector<2x8x1xf32>
    %114 = vector.broadcast %113 : vector<2x8x1xf32> to vector<2x8x32xf32>
    %115 = arith.subf %111, %114 : vector<2x8x32xf32>
    %116 = math.exp %115 : vector<2x8x32xf32>
    %cst_81 = arith.constant dense<0.000000e+00> : vector<2x8xf32>
    %117 = vector.multi_reduction <add>, %116, %cst_81 [2] : vector<2x8x32xf32> to vector<2x8xf32>
    %118 = vector.shape_cast %117 : vector<2x8xf32> to vector<2x8x1xf32>
    %119 = tpu.reciprocal %118 {approx = true} : vector<2x8x1xf32> -> vector<2x8x1xf32>
    %120 = vector.broadcast %119 : vector<2x8x1xf32> to vector<2x8x32xf32>
    %121 = arith.mulf %116, %120 : vector<2x8x32xf32>
    "tpu.trace_start"() <{level = 10 : i32, message = "bqk,bkh->bqh"}> : () -> ()
    %cst_82 = arith.constant dense<0.000000e+00> : vector<2x8x32xf32>
    %122 = tpu.matmul %121, %106, %cst_82 {dimension_numbers = #tpu.dot_dimension_numbers<[2], [1], [1], [2], [0, 0, 0, 1, 1, 2], [0], [0]>} : vector<2x8x32xf32>, vector<2x32x32xf32>, vector<2x8x32xf32> -> vector<2x8x32xf32>
    "tpu.trace_stop"() : () -> ()
    %c1_83 = arith.constant 1 : index
    %c0_84 = arith.constant 0 : index
    %c0_85 = arith.constant 0 : index
    %123 = vector.load %arg4[%c1_83, %c0_84, %c0_85] : memref<8x32x8xf32, #tpu.memory_space<vmem>>, vector<1x32x8xf32>
    %124 = vector.shape_cast %123 : vector<1x32x8xf32> to vector<32x8xf32>
    %cst_86 = arith.constant dense<0.000000e+00> : vector<16x8xf32>
    %125 = tpu.matmul %83, %124, %cst_86 {dimension_numbers = #tpu.dot_dimension_numbers<[1], [0], [0], [1], [0, 0, 1, 1], [], []>} : vector<16x32xf32>, vector<32x8xf32>, vector<16x8xf32> -> vector<16x8xf32>
    %c1_87 = arith.constant 1 : index
    %c0_88 = arith.constant 0 : index
    %c0_89 = arith.constant 0 : index
    %126 = vector.load %arg9[%c1_87, %c0_88, %c0_89] : memref<8x1x8xf32, #tpu.memory_space<vmem>>, vector<1x1x8xf32>
    %127 = vector.shape_cast %126 : vector<1x1x8xf32> to vector<1x8xf32>
    %128 = vector.broadcast %127 : vector<1x8xf32> to vector<16x8xf32>
    %129 = arith.addf %125, %128 : vector<16x8xf32>
    %c5_90 = arith.constant 5 : index
    %c0_91 = arith.constant 0 : index
    %c0_92 = arith.constant 0 : index
    %130 = vector.load %arg4[%c5_90, %c0_91, %c0_92] : memref<8x32x8xf32, #tpu.memory_space<vmem>>, vector<1x32x8xf32>
    %131 = vector.shape_cast %130 : vector<1x32x8xf32> to vector<32x8xf32>
    %cst_93 = arith.constant dense<0.000000e+00> : vector<64x8xf32>
    %132 = tpu.matmul %80, %131, %cst_93 {dimension_numbers = #tpu.dot_dimension_numbers<[1], [0], [0], [1], [0, 0, 1, 1], [], []>} : vector<64x32xf32>, vector<32x8xf32>, vector<64x8xf32> -> vector<64x8xf32>
    %c5_94 = arith.constant 5 : index
    %c0_95 = arith.constant 0 : index
    %c0_96 = arith.constant 0 : index
    %133 = vector.load %arg9[%c5_94, %c0_95, %c0_96] : memref<8x1x8xf32, #tpu.memory_space<vmem>>, vector<1x1x8xf32>
    %134 = vector.shape_cast %133 : vector<1x1x8xf32> to vector<1x8xf32>
    %135 = vector.broadcast %134 : vector<1x8xf32> to vector<64x8xf32>
    %136 = arith.addf %132, %135 : vector<64x8xf32>
    %c5_97 = arith.constant 5 : index
    %c0_98 = arith.constant 0 : index
    %c0_99 = arith.constant 0 : index
    %137 = vector.load %arg3[%c5_97, %c0_98, %c0_99] : memref<8x32x32xf32, #tpu.memory_space<vmem>>, vector<1x32x32xf32>
    %138 = vector.shape_cast %137 : vector<1x32x32xf32> to vector<32x32xf32>
    %cst_100 = arith.constant dense<0.000000e+00> : vector<64x32xf32>
    %139 = tpu.matmul %80, %138, %cst_100 {dimension_numbers = #tpu.dot_dimension_numbers<[1], [0], [0], [1], [0, 0, 1, 1], [], []>} : vector<64x32xf32>, vector<32x32xf32>, vector<64x32xf32> -> vector<64x32xf32>
    %140 = vector.shape_cast %129 : vector<16x8xf32> to vector<2x8x8xf32>
    %141 = vector.shape_cast %136 : vector<64x8xf32> to vector<2x32x8xf32>
    %142 = vector.shape_cast %139 : vector<64x32xf32> to vector<2x32x32xf32>
    "tpu.trace_start"() <{level = 10 : i32, message = "bqd,bkd->bqk"}> : () -> ()
    %cst_101 = arith.constant dense<0.000000e+00> : vector<2x8x32xf32>
    %143 = tpu.matmul %140, %141, %cst_101 {dimension_numbers = #tpu.dot_dimension_numbers<[2], [2], [1], [1], [0, 0, 0, 1, 1, 1], [0], [0]>} : vector<2x8x8xf32>, vector<2x32x8xf32>, vector<2x8x32xf32> -> vector<2x8x32xf32>
    "tpu.trace_stop"() : () -> ()
    %cst_102 = arith.constant 0.353553385 : f32
    %144 = vector.broadcast %cst_102 : f32 to vector<2x8x32xf32>
    %145 = arith.mulf %143, %144 : vector<2x8x32xf32>
    %146 = vector.broadcast %86 : vector<2x1x32xf32> to vector<2x8x32xf32>
    %147 = arith.addf %145, %146 : vector<2x8x32xf32>
    %cst_103 = arith.constant dense<0xFF800000> : vector<2x8xf32>
    %148 = vector.multi_reduction <maximumf>, %147, %cst_103 [2] : vector<2x8x32xf32> to vector<2x8xf32>
    %149 = vector.shape_cast %148 : vector<2x8xf32> to vector<2x8x1xf32>
    %150 = vector.broadcast %149 : vector<2x8x1xf32> to vector<2x8x32xf32>
    %151 = arith.subf %147, %150 : vector<2x8x32xf32>
    %152 = math.exp %151 : vector<2x8x32xf32>
    %cst_104 = arith.constant dense<0.000000e+00> : vector<2x8xf32>
    %153 = vector.multi_reduction <add>, %152, %cst_104 [2] : vector<2x8x32xf32> to vector<2x8xf32>
    %154 = vector.shape_cast %153 : vector<2x8xf32> to vector<2x8x1xf32>
    %155 = tpu.reciprocal %154 {approx = true} : vector<2x8x1xf32> -> vector<2x8x1xf32>
    %156 = vector.broadcast %155 : vector<2x8x1xf32> to vector<2x8x32xf32>
    %157 = arith.mulf %152, %156 : vector<2x8x32xf32>
    "tpu.trace_start"() <{level = 10 : i32, message = "bqk,bkh->bqh"}> : () -> ()
    %cst_105 = arith.constant dense<0.000000e+00> : vector<2x8x32xf32>
    %158 = tpu.matmul %157, %142, %cst_105 {dimension_numbers = #tpu.dot_dimension_numbers<[2], [1], [1], [2], [0, 0, 0, 1, 1, 2], [0], [0]>} : vector<2x8x32xf32>, vector<2x32x32xf32>, vector<2x8x32xf32> -> vector<2x8x32xf32>
    "tpu.trace_stop"() : () -> ()
    %159 = arith.addf %122, %158 : vector<2x8x32xf32>
    %c2_106 = arith.constant 2 : index
    %c0_107 = arith.constant 0 : index
    %c0_108 = arith.constant 0 : index
    %160 = vector.load %arg4[%c2_106, %c0_107, %c0_108] : memref<8x32x8xf32, #tpu.memory_space<vmem>>, vector<1x32x8xf32>
    %161 = vector.shape_cast %160 : vector<1x32x8xf32> to vector<32x8xf32>
    %cst_109 = arith.constant dense<0.000000e+00> : vector<16x8xf32>
    %162 = tpu.matmul %83, %161, %cst_109 {dimension_numbers = #tpu.dot_dimension_numbers<[1], [0], [0], [1], [0, 0, 1, 1], [], []>} : vector<16x32xf32>, vector<32x8xf32>, vector<16x8xf32> -> vector<16x8xf32>
    %c2_110 = arith.constant 2 : index
    %c0_111 = arith.constant 0 : index
    %c0_112 = arith.constant 0 : index
    %163 = vector.load %arg9[%c2_110, %c0_111, %c0_112] : memref<8x1x8xf32, #tpu.memory_space<vmem>>, vector<1x1x8xf32>
    %164 = vector.shape_cast %163 : vector<1x1x8xf32> to vector<1x8xf32>
    %165 = vector.broadcast %164 : vector<1x8xf32> to vector<16x8xf32>
    %166 = arith.addf %162, %165 : vector<16x8xf32>
    %c6_113 = arith.constant 6 : index
    %c0_114 = arith.constant 0 : index
    %c0_115 = arith.constant 0 : index
    %167 = vector.load %arg4[%c6_113, %c0_114, %c0_115] : memref<8x32x8xf32, #tpu.memory_space<vmem>>, vector<1x32x8xf32>
    %168 = vector.shape_cast %167 : vector<1x32x8xf32> to vector<32x8xf32>
    %cst_116 = arith.constant dense<0.000000e+00> : vector<64x8xf32>
    %169 = tpu.matmul %80, %168, %cst_116 {dimension_numbers = #tpu.dot_dimension_numbers<[1], [0], [0], [1], [0, 0, 1, 1], [], []>} : vector<64x32xf32>, vector<32x8xf32>, vector<64x8xf32> -> vector<64x8xf32>
    %c6_117 = arith.constant 6 : index
    %c0_118 = arith.constant 0 : index
    %c0_119 = arith.constant 0 : index
    %170 = vector.load %arg9[%c6_117, %c0_118, %c0_119] : memref<8x1x8xf32, #tpu.memory_space<vmem>>, vector<1x1x8xf32>
    %171 = vector.shape_cast %170 : vector<1x1x8xf32> to vector<1x8xf32>
    %172 = vector.broadcast %171 : vector<1x8xf32> to vector<64x8xf32>
    %173 = arith.addf %169, %172 : vector<64x8xf32>
    %c6_120 = arith.constant 6 : index
    %c0_121 = arith.constant 0 : index
    %c0_122 = arith.constant 0 : index
    %174 = vector.load %arg3[%c6_120, %c0_121, %c0_122] : memref<8x32x32xf32, #tpu.memory_space<vmem>>, vector<1x32x32xf32>
    %175 = vector.shape_cast %174 : vector<1x32x32xf32> to vector<32x32xf32>
    %cst_123 = arith.constant dense<0.000000e+00> : vector<64x32xf32>
    %176 = tpu.matmul %80, %175, %cst_123 {dimension_numbers = #tpu.dot_dimension_numbers<[1], [0], [0], [1], [0, 0, 1, 1], [], []>} : vector<64x32xf32>, vector<32x32xf32>, vector<64x32xf32> -> vector<64x32xf32>
    %177 = vector.shape_cast %166 : vector<16x8xf32> to vector<2x8x8xf32>
    %178 = vector.shape_cast %173 : vector<64x8xf32> to vector<2x32x8xf32>
    %179 = vector.shape_cast %176 : vector<64x32xf32> to vector<2x32x32xf32>
    "tpu.trace_start"() <{level = 10 : i32, message = "bqd,bkd->bqk"}> : () -> ()
    %cst_124 = arith.constant dense<0.000000e+00> : vector<2x8x32xf32>
    %180 = tpu.matmul %177, %178, %cst_124 {dimension_numbers = #tpu.dot_dimension_numbers<[2], [2], [1], [1], [0, 0, 0, 1, 1, 1], [0], [0]>} : vector<2x8x8xf32>, vector<2x32x8xf32>, vector<2x8x32xf32> -> vector<2x8x32xf32>
    "tpu.trace_stop"() : () -> ()
    %cst_125 = arith.constant 0.353553385 : f32
    %181 = vector.broadcast %cst_125 : f32 to vector<2x8x32xf32>
    %182 = arith.mulf %180, %181 : vector<2x8x32xf32>
    %183 = vector.broadcast %86 : vector<2x1x32xf32> to vector<2x8x32xf32>
    %184 = arith.addf %182, %183 : vector<2x8x32xf32>
    %cst_126 = arith.constant dense<0xFF800000> : vector<2x8xf32>
    %185 = vector.multi_reduction <maximumf>, %184, %cst_126 [2] : vector<2x8x32xf32> to vector<2x8xf32>
    %186 = vector.shape_cast %185 : vector<2x8xf32> to vector<2x8x1xf32>
    %187 = vector.broadcast %186 : vector<2x8x1xf32> to vector<2x8x32xf32>
    %188 = arith.subf %184, %187 : vector<2x8x32xf32>
    %189 = math.exp %188 : vector<2x8x32xf32>
    %cst_127 = arith.constant dense<0.000000e+00> : vector<2x8xf32>
    %190 = vector.multi_reduction <add>, %189, %cst_127 [2] : vector<2x8x32xf32> to vector<2x8xf32>
    %191 = vector.shape_cast %190 : vector<2x8xf32> to vector<2x8x1xf32>
    %192 = tpu.reciprocal %191 {approx = true} : vector<2x8x1xf32> -> vector<2x8x1xf32>
    %193 = vector.broadcast %192 : vector<2x8x1xf32> to vector<2x8x32xf32>
    %194 = arith.mulf %189, %193 : vector<2x8x32xf32>
    "tpu.trace_start"() <{level = 10 : i32, message = "bqk,bkh->bqh"}> : () -> ()
    %cst_128 = arith.constant dense<0.000000e+00> : vector<2x8x32xf32>
    %195 = tpu.matmul %194, %179, %cst_128 {dimension_numbers = #tpu.dot_dimension_numbers<[2], [1], [1], [2], [0, 0, 0, 1, 1, 2], [0], [0]>} : vector<2x8x32xf32>, vector<2x32x32xf32>, vector<2x8x32xf32> -> vector<2x8x32xf32>
    "tpu.trace_stop"() : () -> ()
    %196 = arith.addf %159, %195 : vector<2x8x32xf32>
    %c3_129 = arith.constant 3 : index
    %c0_130 = arith.constant 0 : index
    %c0_131 = arith.constant 0 : index
    %197 = vector.load %arg4[%c3_129, %c0_130, %c0_131] : memref<8x32x8xf32, #tpu.memory_space<vmem>>, vector<1x32x8xf32>
    %198 = vector.shape_cast %197 : vector<1x32x8xf32> to vector<32x8xf32>
    %cst_132 = arith.constant dense<0.000000e+00> : vector<16x8xf32>
    %199 = tpu.matmul %83, %198, %cst_132 {dimension_numbers = #tpu.dot_dimension_numbers<[1], [0], [0], [1], [0, 0, 1, 1], [], []>} : vector<16x32xf32>, vector<32x8xf32>, vector<16x8xf32> -> vector<16x8xf32>
    %c3_133 = arith.constant 3 : index
    %c0_134 = arith.constant 0 : index
    %c0_135 = arith.constant 0 : index
    %200 = vector.load %arg9[%c3_133, %c0_134, %c0_135] : memref<8x1x8xf32, #tpu.memory_space<vmem>>, vector<1x1x8xf32>
    %201 = vector.shape_cast %200 : vector<1x1x8xf32> to vector<1x8xf32>
    %202 = vector.broadcast %201 : vector<1x8xf32> to vector<16x8xf32>
    %203 = arith.addf %199, %202 : vector<16x8xf32>
    %c7_136 = arith.constant 7 : index
    %c0_137 = arith.constant 0 : index
    %c0_138 = arith.constant 0 : index
    %204 = vector.load %arg4[%c7_136, %c0_137, %c0_138] : memref<8x32x8xf32, #tpu.memory_space<vmem>>, vector<1x32x8xf32>
    %205 = vector.shape_cast %204 : vector<1x32x8xf32> to vector<32x8xf32>
    %cst_139 = arith.constant dense<0.000000e+00> : vector<64x8xf32>
    %206 = tpu.matmul %80, %205, %cst_139 {dimension_numbers = #tpu.dot_dimension_numbers<[1], [0], [0], [1], [0, 0, 1, 1], [], []>} : vector<64x32xf32>, vector<32x8xf32>, vector<64x8xf32> -> vector<64x8xf32>
    %c7_140 = arith.constant 7 : index
    %c0_141 = arith.constant 0 : index
    %c0_142 = arith.constant 0 : index
    %207 = vector.load %arg9[%c7_140, %c0_141, %c0_142] : memref<8x1x8xf32, #tpu.memory_space<vmem>>, vector<1x1x8xf32>
    %208 = vector.shape_cast %207 : vector<1x1x8xf32> to vector<1x8xf32>
    %209 = vector.broadcast %208 : vector<1x8xf32> to vector<64x8xf32>
    %210 = arith.addf %206, %209 : vector<64x8xf32>
    %c7_143 = arith.constant 7 : index
    %c0_144 = arith.constant 0 : index
    %c0_145 = arith.constant 0 : index
    %211 = vector.load %arg3[%c7_143, %c0_144, %c0_145] : memref<8x32x32xf32, #tpu.memory_space<vmem>>, vector<1x32x32xf32>
    %212 = vector.shape_cast %211 : vector<1x32x32xf32> to vector<32x32xf32>
    %cst_146 = arith.constant dense<0.000000e+00> : vector<64x32xf32>
    %213 = tpu.matmul %80, %212, %cst_146 {dimension_numbers = #tpu.dot_dimension_numbers<[1], [0], [0], [1], [0, 0, 1, 1], [], []>} : vector<64x32xf32>, vector<32x32xf32>, vector<64x32xf32> -> vector<64x32xf32>
    %214 = vector.shape_cast %203 : vector<16x8xf32> to vector<2x8x8xf32>
    %215 = vector.shape_cast %210 : vector<64x8xf32> to vector<2x32x8xf32>
    %216 = vector.shape_cast %213 : vector<64x32xf32> to vector<2x32x32xf32>
    "tpu.trace_start"() <{level = 10 : i32, message = "bqd,bkd->bqk"}> : () -> ()
    %cst_147 = arith.constant dense<0.000000e+00> : vector<2x8x32xf32>
    %217 = tpu.matmul %214, %215, %cst_147 {dimension_numbers = #tpu.dot_dimension_numbers<[2], [2], [1], [1], [0, 0, 0, 1, 1, 1], [0], [0]>} : vector<2x8x8xf32>, vector<2x32x8xf32>, vector<2x8x32xf32> -> vector<2x8x32xf32>
    "tpu.trace_stop"() : () -> ()
    %cst_148 = arith.constant 0.353553385 : f32
    %218 = vector.broadcast %cst_148 : f32 to vector<2x8x32xf32>
    %219 = arith.mulf %217, %218 : vector<2x8x32xf32>
    %220 = vector.broadcast %86 : vector<2x1x32xf32> to vector<2x8x32xf32>
    %221 = arith.addf %219, %220 : vector<2x8x32xf32>
    %cst_149 = arith.constant dense<0xFF800000> : vector<2x8xf32>
    %222 = vector.multi_reduction <maximumf>, %221, %cst_149 [2] : vector<2x8x32xf32> to vector<2x8xf32>
    %223 = vector.shape_cast %222 : vector<2x8xf32> to vector<2x8x1xf32>
    %224 = vector.broadcast %223 : vector<2x8x1xf32> to vector<2x8x32xf32>
    %225 = arith.subf %221, %224 : vector<2x8x32xf32>
    %226 = math.exp %225 : vector<2x8x32xf32>
    %cst_150 = arith.constant dense<0.000000e+00> : vector<2x8xf32>
    %227 = vector.multi_reduction <add>, %226, %cst_150 [2] : vector<2x8x32xf32> to vector<2x8xf32>
    %228 = vector.shape_cast %227 : vector<2x8xf32> to vector<2x8x1xf32>
    %229 = tpu.reciprocal %228 {approx = true} : vector<2x8x1xf32> -> vector<2x8x1xf32>
    %230 = vector.broadcast %229 : vector<2x8x1xf32> to vector<2x8x32xf32>
    %231 = arith.mulf %226, %230 : vector<2x8x32xf32>
    "tpu.trace_start"() <{level = 10 : i32, message = "bqk,bkh->bqh"}> : () -> ()
    %cst_151 = arith.constant dense<0.000000e+00> : vector<2x8x32xf32>
    %232 = tpu.matmul %231, %216, %cst_151 {dimension_numbers = #tpu.dot_dimension_numbers<[2], [1], [1], [2], [0, 0, 0, 1, 1, 2], [0], [0]>} : vector<2x8x32xf32>, vector<2x32x32xf32>, vector<2x8x32xf32> -> vector<2x8x32xf32>
    "tpu.trace_stop"() : () -> ()
    %233 = arith.addf %196, %232 : vector<2x8x32xf32>
    %234 = vector.shape_cast %233 : vector<2x8x32xf32> to vector<16x32xf32>
    %235 = arith.addf %85, %234 : vector<16x32xf32>
    %236 = vector.broadcast %17 : vector<1x32xf32> to vector<16x32xf32>
    %237 = arith.addf %235, %236 : vector<16x32xf32>
    %cst_152 = arith.constant dense<0.000000e+00> : vector<16xf32>
    %238 = vector.multi_reduction <add>, %237, %cst_152 [1] : vector<16x32xf32> to vector<16xf32>
    %239 = vector.shape_cast %238 : vector<16xf32> to vector<16x1xf32>
    %cst_153 = arith.constant 3.200000e+01 : f32
    %240 = vector.broadcast %cst_153 : f32 to vector<16x1xf32>
    %241 = arith.divf %239, %240 : vector<16x1xf32>
    %242 = vector.broadcast %241 : vector<16x1xf32> to vector<16x32xf32>
    %243 = arith.subf %237, %242 : vector<16x32xf32>
    %244 = arith.mulf %243, %243 : vector<16x32xf32>
    %cst_154 = arith.constant dense<0.000000e+00> : vector<16xf32>
    %245 = vector.multi_reduction <add>, %244, %cst_154 [1] : vector<16x32xf32> to vector<16xf32>
    %246 = vector.shape_cast %245 : vector<16xf32> to vector<16x1xf32>
    %cst_155 = arith.constant 3.200000e+01 : f32
    %247 = vector.broadcast %cst_155 : f32 to vector<16x1xf32>
    %248 = arith.divf %246, %247 : vector<16x1xf32>
    %249 = vector.broadcast %241 : vector<16x1xf32> to vector<16x32xf32>
    %250 = arith.subf %237, %249 : vector<16x32xf32>
    %cst_156 = arith.constant 9.99999974E-6 : f32
    %251 = vector.broadcast %cst_156 : f32 to vector<16x1xf32>
    %252 = arith.addf %248, %251 : vector<16x1xf32>
    %253 = math.rsqrt %252 : vector<16x1xf32>
    %254 = vector.broadcast %253 : vector<16x1xf32> to vector<16x32xf32>
    %255 = arith.mulf %250, %254 : vector<16x32xf32>
    %256 = vector.broadcast %19 : vector<1x32xf32> to vector<16x32xf32>
    %257 = arith.mulf %255, %256 : vector<16x32xf32>
    %258 = vector.broadcast %21 : vector<1x32xf32> to vector<16x32xf32>
    %259 = arith.addf %257, %258 : vector<16x32xf32>
    %cst_157 = arith.constant dense<0.000000e+00> : vector<16x32xf32>
    %260 = tpu.matmul %259, %3, %cst_157 {dimension_numbers = #tpu.dot_dimension_numbers<[1], [0], [0], [1], [0, 0, 1, 1], [], []>} : vector<16x32xf32>, vector<32x32xf32>, vector<16x32xf32> -> vector<16x32xf32>
    %261 = vector.broadcast %23 : vector<1x32xf32> to vector<16x32xf32>
    %262 = arith.addf %260, %261 : vector<16x32xf32>
    %cst_158 = arith.constant dense<0.000000e+00> : vector<16xf32>
    %263 = vector.multi_reduction <add>, %262, %cst_158 [1] : vector<16x32xf32> to vector<16xf32>
    %264 = vector.shape_cast %263 : vector<16xf32> to vector<16x1xf32>
    %cst_159 = arith.constant 3.200000e+01 : f32
    %265 = vector.broadcast %cst_159 : f32 to vector<16x1xf32>
    %266 = arith.divf %264, %265 : vector<16x1xf32>
    %267 = vector.broadcast %266 : vector<16x1xf32> to vector<16x32xf32>
    %268 = arith.subf %262, %267 : vector<16x32xf32>
    %269 = arith.mulf %268, %268 : vector<16x32xf32>
    %cst_160 = arith.constant dense<0.000000e+00> : vector<16xf32>
    %270 = vector.multi_reduction <add>, %269, %cst_160 [1] : vector<16x32xf32> to vector<16xf32>
    %271 = vector.shape_cast %270 : vector<16xf32> to vector<16x1xf32>
    %cst_161 = arith.constant 3.200000e+01 : f32
    %272 = vector.broadcast %cst_161 : f32 to vector<16x1xf32>
    %273 = arith.divf %271, %272 : vector<16x1xf32>
    %274 = vector.broadcast %266 : vector<16x1xf32> to vector<16x32xf32>
    %275 = arith.subf %262, %274 : vector<16x32xf32>
    %cst_162 = arith.constant 9.99999974E-6 : f32
    %276 = vector.broadcast %cst_162 : f32 to vector<16x1xf32>
    %277 = arith.addf %273, %276 : vector<16x1xf32>
    %278 = math.rsqrt %277 : vector<16x1xf32>
    %279 = vector.broadcast %278 : vector<16x1xf32> to vector<16x32xf32>
    %280 = arith.mulf %275, %279 : vector<16x32xf32>
    %281 = vector.broadcast %25 : vector<1x32xf32> to vector<16x32xf32>
    %282 = arith.mulf %280, %281 : vector<16x32xf32>
    %283 = vector.broadcast %27 : vector<1x32xf32> to vector<16x32xf32>
    %284 = arith.addf %282, %283 : vector<16x32xf32>
    %cst_163 = arith.constant 5.000000e-01 : f32
    %285 = vector.broadcast %cst_163 : f32 to vector<16x32xf32>
    %286 = arith.mulf %285, %284 : vector<16x32xf32>
    %cst_164 = arith.constant 4.471500e-02 : f32
    %287 = vector.broadcast %cst_164 : f32 to vector<16x32xf32>
    %288 = arith.mulf %287, %284 : vector<16x32xf32>
    %289 = arith.mulf %288, %284 : vector<16x32xf32>
    %290 = arith.mulf %289, %284 : vector<16x32xf32>
    %291 = arith.addf %284, %290 : vector<16x32xf32>
    %cst_165 = arith.constant 0.797884583 : f32
    %292 = vector.broadcast %cst_165 : f32 to vector<16x32xf32>
    %293 = arith.mulf %292, %291 : vector<16x32xf32>
    %294 = math.tanh %293 : vector<16x32xf32>
    %cst_166 = arith.constant 1.000000e+00 : f32
    %295 = vector.broadcast %cst_166 : f32 to vector<16x32xf32>
    %296 = arith.addf %295, %294 : vector<16x32xf32>
    %297 = arith.mulf %286, %296 : vector<16x32xf32>
    %c0_167 = arith.constant 0 : index
    %c0_168 = arith.constant 0 : index
    %298 = vector.load %arg5[%c0_167, %c0_168] : memref<32x128xf32, #tpu.memory_space<vmem>>, vector<32x128xf32>
    %cst_169 = arith.constant dense<0.000000e+00> : vector<16x128xf32>
    %299 = tpu.matmul %297, %298, %cst_169 {dimension_numbers = #tpu.dot_dimension_numbers<[1], [0], [0], [1], [0, 0, 1, 1], [], []>} : vector<16x32xf32>, vector<32x128xf32>, vector<16x128xf32> -> vector<16x128xf32>
    %300 = vector.broadcast %37 : vector<1x128xf32> to vector<16x128xf32>
    %301 = arith.addf %299, %300 : vector<16x128xf32>
    %cst_170 = arith.constant dense<0.000000e+00> : vector<16xf32>
    %302 = vector.multi_reduction <add>, %301, %cst_170 [1] : vector<16x128xf32> to vector<16xf32>
    %303 = vector.shape_cast %302 : vector<16xf32> to vector<16x1xf32>
    %cst_171 = arith.constant 1.280000e+02 : f32
    %304 = vector.broadcast %cst_171 : f32 to vector<16x1xf32>
    %305 = arith.divf %303, %304 : vector<16x1xf32>
    %306 = vector.broadcast %305 : vector<16x1xf32> to vector<16x128xf32>
    %307 = arith.subf %301, %306 : vector<16x128xf32>
    %308 = arith.mulf %307, %307 : vector<16x128xf32>
    %cst_172 = arith.constant dense<0.000000e+00> : vector<16xf32>
    %309 = vector.multi_reduction <add>, %308, %cst_172 [1] : vector<16x128xf32> to vector<16xf32>
    %310 = vector.shape_cast %309 : vector<16xf32> to vector<16x1xf32>
    %cst_173 = arith.constant 1.280000e+02 : f32
    %311 = vector.broadcast %cst_173 : f32 to vector<16x1xf32>
    %312 = arith.divf %310, %311 : vector<16x1xf32>
    %313 = vector.broadcast %305 : vector<16x1xf32> to vector<16x128xf32>
    %314 = arith.subf %301, %313 : vector<16x128xf32>
    %cst_174 = arith.constant 9.99999974E-6 : f32
    %315 = vector.broadcast %cst_174 : f32 to vector<16x1xf32>
    %316 = arith.addf %312, %315 : vector<16x1xf32>
    %317 = math.rsqrt %316 : vector<16x1xf32>
    %318 = vector.broadcast %317 : vector<16x1xf32> to vector<16x128xf32>
    %319 = arith.mulf %314, %318 : vector<16x128xf32>
    %320 = vector.broadcast %39 : vector<1x128xf32> to vector<16x128xf32>
    %321 = arith.mulf %319, %320 : vector<16x128xf32>
    %322 = vector.broadcast %41 : vector<1x128xf32> to vector<16x128xf32>
    %323 = arith.addf %321, %322 : vector<16x128xf32>
    %cst_175 = arith.constant 5.000000e-01 : f32
    %324 = vector.broadcast %cst_175 : f32 to vector<16x128xf32>
    %325 = arith.mulf %324, %323 : vector<16x128xf32>
    %cst_176 = arith.constant 4.471500e-02 : f32
    %326 = vector.broadcast %cst_176 : f32 to vector<16x128xf32>
    %327 = arith.mulf %326, %323 : vector<16x128xf32>
    %328 = arith.mulf %327, %323 : vector<16x128xf32>
    %329 = arith.mulf %328, %323 : vector<16x128xf32>
    %330 = arith.addf %323, %329 : vector<16x128xf32>
    %cst_177 = arith.constant 0.797884583 : f32
    %331 = vector.broadcast %cst_177 : f32 to vector<16x128xf32>
    %332 = arith.mulf %331, %330 : vector<16x128xf32>
    %333 = math.tanh %332 : vector<16x128xf32>
    %cst_178 = arith.constant 1.000000e+00 : f32
    %334 = vector.broadcast %cst_178 : f32 to vector<16x128xf32>
    %335 = arith.addf %334, %333 : vector<16x128xf32>
    %336 = arith.mulf %325, %335 : vector<16x128xf32>
    %c0_179 = arith.constant 0 : index
    %c0_180 = arith.constant 0 : index
    %337 = vector.load %arg6[%c0_179, %c0_180] : memref<128x32xf32, #tpu.memory_space<vmem>>, vector<128x32xf32>
    %cst_181 = arith.constant dense<0.000000e+00> : vector<16x32xf32>
    %338 = tpu.matmul %336, %337, %cst_181 {dimension_numbers = #tpu.dot_dimension_numbers<[1], [0], [0], [1], [0, 0, 1, 1], [], []>} : vector<16x128xf32>, vector<128x32xf32>, vector<16x32xf32> -> vector<16x32xf32>
    %339 = vector.broadcast %29 : vector<1x32xf32> to vector<16x32xf32>
    %340 = arith.addf %338, %339 : vector<16x32xf32>
    %341 = arith.addf %237, %340 : vector<16x32xf32>
    %cst_182 = arith.constant dense<0.000000e+00> : vector<16xf32>
    %342 = vector.multi_reduction <add>, %341, %cst_182 [1] : vector<16x32xf32> to vector<16xf32>
    %343 = vector.shape_cast %342 : vector<16xf32> to vector<16x1xf32>
    %cst_183 = arith.constant 3.200000e+01 : f32
    %344 = vector.broadcast %cst_183 : f32 to vector<16x1xf32>
    %345 = arith.divf %343, %344 : vector<16x1xf32>
    %346 = vector.broadcast %345 : vector<16x1xf32> to vector<16x32xf32>
    %347 = arith.subf %341, %346 : vector<16x32xf32>
    %348 = arith.mulf %347, %347 : vector<16x32xf32>
    %cst_184 = arith.constant dense<0.000000e+00> : vector<16xf32>
    %349 = vector.multi_reduction <add>, %348, %cst_184 [1] : vector<16x32xf32> to vector<16xf32>
    %350 = vector.shape_cast %349 : vector<16xf32> to vector<16x1xf32>
    %cst_185 = arith.constant 3.200000e+01 : f32
    %351 = vector.broadcast %cst_185 : f32 to vector<16x1xf32>
    %352 = arith.divf %350, %351 : vector<16x1xf32>
    %353 = vector.broadcast %345 : vector<16x1xf32> to vector<16x32xf32>
    %354 = arith.subf %341, %353 : vector<16x32xf32>
    %cst_186 = arith.constant 9.99999974E-6 : f32
    %355 = vector.broadcast %cst_186 : f32 to vector<16x1xf32>
    %356 = arith.addf %352, %355 : vector<16x1xf32>
    %357 = math.rsqrt %356 : vector<16x1xf32>
    %358 = vector.broadcast %357 : vector<16x1xf32> to vector<16x32xf32>
    %359 = arith.mulf %354, %358 : vector<16x32xf32>
    %360 = vector.broadcast %31 : vector<1x32xf32> to vector<16x32xf32>
    %361 = arith.mulf %359, %360 : vector<16x32xf32>
    %362 = vector.broadcast %33 : vector<1x32xf32> to vector<16x32xf32>
    %363 = arith.addf %361, %362 : vector<16x32xf32>
    %cst_187 = arith.constant dense<0.000000e+00> : vector<16x32xf32>
    %364 = tpu.matmul %363, %5, %cst_187 {dimension_numbers = #tpu.dot_dimension_numbers<[1], [0], [0], [1], [0, 0, 1, 1], [], []>} : vector<16x32xf32>, vector<32x32xf32>, vector<16x32xf32> -> vector<16x32xf32>
    %365 = vector.broadcast %35 : vector<1x32xf32> to vector<16x32xf32>
    %366 = arith.addf %364, %365 : vector<16x32xf32>
    %367 = math.tanh %366 : vector<16x32xf32>
    %368 = vector.shape_cast %367 : vector<16x32xf32> to vector<2x8x32xf32>
    %c0_188 = arith.constant 0 : index
    %c0_189 = arith.constant 0 : index
    %c0_190 = arith.constant 0 : index
    %369 = vector.load %arg10[%c0_188, %c0_189, %c0_190] : memref<2x8x32xf32, #tpu.memory_space<vmem>>, vector<2x8x32xf32>
    tpu.vector_store %arg10[%c0_188, %c0_189, %c0_190], %368 {strides = array<i32>} : memref<2x8x32xf32, #tpu.memory_space<vmem>>, vector<2x8x32xf32>,
    return
  }
  func.func @transform_0(%arg0: i32) -> (i32, i32, i32) {
    %c0_i32 = arith.constant 0 : i32
    %c0_i32_0 = arith.constant 0 : i32
    %c0_i32_1 = arith.constant 0 : i32
    return %arg0, %c0_i32, %c0_i32_0 : i32, i32, i32
  }
  func.func @transform_1(%arg0: i32) -> (i32, i32, i32) {
    %c0_i32 = arith.constant 0 : i32
    %c0_i32_0 = arith.constant 0 : i32
    %c0_i32_1 = arith.constant 0 : i32
    return %arg0, %c0_i32, %c0_i32_0 : i32, i32, i32
  }
  func.func @transform_2(%arg0: i32) -> (i32, i32, i32) {
    %c0_i32 = arith.constant 0 : i32
    %c0_i32_0 = arith.constant 0 : i32
    %c0_i32_1 = arith.constant 0 : i32
    %c0_i32_2 = arith.constant 0 : i32
    return %c0_i32, %c0_i32_0, %c0_i32_1 : i32, i32, i32
  }
  func.func @transform_3(%arg0: i32) -> (i32, i32, i32) {
    %c0_i32 = arith.constant 0 : i32
    %c0_i32_0 = arith.constant 0 : i32
    %c0_i32_1 = arith.constant 0 : i32
    %c0_i32_2 = arith.constant 0 : i32
    return %c0_i32, %c0_i32_0, %c0_i32_1 : i32, i32, i32
  }
  func.func @transform_4(%arg0: i32) -> (i32, i32) {
    %c0_i32 = arith.constant 0 : i32
    %c0_i32_0 = arith.constant 0 : i32
    %c0_i32_1 = arith.constant 0 : i32
    return %c0_i32, %c0_i32_0 : i32, i32
  }
  func.func @transform_5(%arg0: i32) -> (i32, i32) {
    %c0_i32 = arith.constant 0 : i32
    %c0_i32_0 = arith.constant 0 : i32
    %c0_i32_1 = arith.constant 0 : i32
    return %c0_i32, %c0_i32_0 : i32, i32
  }
  func.func @transform_6(%arg0: i32) -> (i32, i32, i32) {
    %c0_i32 = arith.constant 0 : i32
    %c0_i32_0 = arith.constant 0 : i32
    %c0_i32_1 = arith.constant 0 : i32
    %c0_i32_2 = arith.constant 0 : i32
    return %c0_i32, %c0_i32_0, %c0_i32_1 : i32, i32, i32
  }
  func.func @transform_7(%arg0: i32) -> (i32, i32, i32) {
    %c0_i32 = arith.constant 0 : i32
    %c0_i32_0 = arith.constant 0 : i32
    %c0_i32_1 = arith.constant 0 : i32
    %c0_i32_2 = arith.constant 0 : i32
    return %c0_i32, %c0_i32_0, %c0_i32_1 : i32, i32, i32
  }
  func.func @transform_8(%arg0: i32) -> (i32, i32, i32) {
    %c0_i32 = arith.constant 0 : i32
    %c0_i32_0 = arith.constant 0 : i32
    %c0_i32_1 = arith.constant 0 : i32
    %c0_i32_2 = arith.constant 0 : i32
    return %c0_i32, %c0_i32_0, %c0_i32_1 : i32, i32, i32
  }
  func.func @transform_9(%arg0: i32) -> (i32, i32, i32) {
    %c0_i32 = arith.constant 0 : i32
    %c0_i32_0 = arith.constant 0 : i32
    %c0_i32_1 = arith.constant 0 : i32
    return %arg0, %c0_i32, %c0_i32_0 : i32, i32, i32
  }
}

</mosaic_0001>

<bundles_post_ra>
// kernel: tpu_custom_call.1
= control target key start
LH: loop header
LB: loop body
LE: loop exit
PB: predicated region body
PF: predicated region fallthrough
CT: control target
= control target key end

     0   :  { %vm98_vm0 = vcmask 261120   ;;  %s5907_s0 = inlined_call_operand.vmem [shape: f32[2,32,32], index: 0, kind: input, shape index: {}]   ;;  %s5908_s1 = inlined_call_operand.vmem [shape: f32[2,1,32], index: 1, kind: input, shape index: {}]   ;;  %s5909_s2 = inlined_call_operand.vmem [shape: f32[8,32,32], index: 2, kind: input, shape index: {}]   ;;  %s5910_s3 = inlined_call_operand.vmem [shape: f32[8,32,8], index: 3, kind: input, shape index: {}]   ;;  %s5911_s4 = inlined_call_operand.vmem [shape: f32[32,128], index: 4, kind: input, shape index: {}]   ;;  %s5912_s5 = inlined_call_operand.vmem [shape: f32[128,32], index: 5, kind: input, shape index: {}]   ;;  %s5913_s6 = inlined_call_operand.vmem [shape: f32[14,1,32], index: 6, kind: input, shape index: {}]   ;;  %s5914_s7 = inlined_call_operand.vmem [shape: f32[3,1,128], index: 7, kind: input, shape index: {}]   ;;  %s5915_s8 = inlined_call_operand.vmem [shape: f32[8,1,8], index: 8, kind: input, shape index: {}]   ;;  %s5916_s9 = inlined_call_operand.hbm [shape: f32[2,8,32], index: 9, kind: output, shape index: {}]  }
   0x1   :  { %v33_v0 = vld [vmem:[%s5909_s2] sm:$0xff]  ;;  %v34_v1 = vld [vmem:[%s5909_s2 + $0x8] sm:$0xff]  ;;  %v35_v2 = vld [vmem:[%s5909_s2 + $0x10] sm:$0xff] }
   0x2   :  { %v4615_v3 = vpack.c.bf16 %v34_v1, %v33_v0  ;;  %v36_v4 = vld [vmem:[%s5909_s2 + $0x18] sm:$0xff]  ;;  %v84_v5 = vld [vmem:[%s5907_s0] sm:$0xff] }
   0x3   :  { %v4619_v6 = vpack.c.bf16 %v36_v4, %v35_v2  ;;  %4155 = vmatprep.mubr.msk.f32.mxu1 %vm98_vm0, %v84_v5  ;;  %v3668_v7 = vld [vmem:[%s5909_s2 + $0x60] sm:$0xff] }
   0x4   :  { %4616 = vmatprep.subr.bf16.mxu1 %v4615_v3  ;;  %v3696_v8 = vld [vmem:[%s5913_s6] ss:$0 sm:$0xff] }
   0x5   :  { %4618 = vmatpush3.bf16.msra.mxu1 %v4615_v3 }
   0x6   :  { %14 = vsyncpa [#allocation3], 0  ;;  %4620 = vmatprep.subr.bf16.mxu1 %v4619_v6  ;;  %v5071_v9 = vadd.f32 %v3696_v8, %v3668_v7  ;;  %v85_v11 = vld [vmem:[%s5907_s0 + $0x8] sm:$0xff]  ;;  %v86_v12 = vld [vmem:[%s5907_s0 + $0x10] sm:$0xff]  ;;  %vm4994_vm1 = vmmov 0   ;;  %vm732_vm2 = vcmask 64512  }
   0x7   :  { %v87_v13 = vld [vmem:[%s5907_s0 + $0x18] sm:$0xff]  ;;  %v88_v14 = vld [vmem:[%s5907_s0 + $0x20] sm:$0xff]  ;;  %v89_v15 = vld [vmem:[%s5907_s0 + $0x28] sm:$0xff]  ;;  %s4996_s29 = smov [#allocation2]  }
   0x8   :  { %v259_v10 = vsel %vm98_vm0, %v5071_v9, 0.0  ;;  %v90_v16 = vld [vmem:[%s5907_s0 + $0x30] sm:$0xff]  ;;  %v91_v17 = vld [vmem:[%s5907_s0 + $0x38] sm:$0xff]  ;;  %v3687_v18 = vld [vmem:[%s5913_s6 + $0x1] ss:$0 sm:$0xff]  ;;  %s3649_s30 = sshll.u32 %s4996_s29, 4  ;;  %s3650_s30 = int_to_ptr.vmem [resolvable:$true] %s3649_s30 }
   0x9   :  { %4622 = vmatpush3.bf16.msra.mxu1 %v4619_v6  ;;  %260 = vadd.xlane.f32.xlu0 %v259_v10  ;;  %v3669_v21 = vld [vmem:[%s5909_s2 + $0x68] sm:$0xff]  ;;  %v3671_v26 = vld [vmem:[%s5909_s2 + $0x78] sm:$0xff]  ;;  %v3670_v30 = vld [vmem:[%s5909_s2 + $0x70] sm:$0xff]  ;;  %s4969_s10 = scalar_lea.vmem %s3650_s30, 256  ;;  %p4974_p1 = scmp.lt.s32.totalorder %s3650_s30, %s3650_s30 }
   0xa   :  { %v394_v58 = vld [vmem:[%s5910_s3] sm:$0xff]  ;;  %v395_v59 = vld [vmem:[%s5910_s3 + $0x8] sm:$0xff]  ;;  %v396_v61 = vld [vmem:[%s5910_s3 + $0x10] sm:$0xff]  ;;  %p4970_p0 = scmp.ne.s32.totalorder %s3650_s30, %s4969_s10  ;;  %p4975_p2 = scmp.lt.s32.totalorder %s4969_s10, %s4969_s10 }
   0xb   :  { %v4623_v60 = vpack.c.bf16 %v395_v59, %v394_v58  ;;  %v397_v62 = vld [vmem:[%s5910_s3 + $0x18] sm:$0xff]  ;;  %vm5304_vm3 = vmpackc.low %vm732_vm2, %vm732_vm2 }
   0xc   :  { %4156 = vmatmul.mubr.msk.f32.vlgmr.msra.gmra.mrb[0].mxu1 %vm98_vm0, %v85_v11  ;;  %v4627_v63 = vpack.c.bf16 %v397_v62, %v396_v61  ;;  %p4976_p3 = por %p4975_p2, %p4974_p1 }
   0xd   :  { %4158 = vmatprep.mubr.msk.f32.mxu1 %vm98_vm0, %v86_v12  ;;  %272 = vadd.xlane.f32.xlu0 %v259_v10 }
   0xe   :  { %4624 = vmatprep.subr.bf16.mxu1 %v4623_v60  ;;  %p4977_p4 = pnand %p4976_p3, %p4970_p0 }
   0xf   :  { %4626 = vmatpush3.bf16.msra.mxu1 %v4623_v60 }
  0x10   :  { %4159 = vmatmul.mubr.msk.f32.gmra.mrb[2].mxu1 %vm98_vm0, %v87_v13  ;;  %4628 = vmatprep.subr.bf16.mxu1 %v4627_v63 }
  0x11   :  { %4161 = vmatprep.mubr.msk.f32.mxu1 %vm98_vm0, %v88_v14 }
  0x13   :  { %4630 = vmatpush3.bf16.msra.mxu1 %v4627_v63 }
  0x14   :  { %4162 = vmatmul.mubr.msk.f32.gmra.mrb[4].mxu1 %vm98_vm0, %v89_v15 }
  0x15   :  { %4164 = vmatprep.mubr.msk.f32.mxu1 %vm98_vm0, %v90_v16 }
  0x18   :  { %4165 = vmatmul.mubr.msk.f32.gmra.mrb[6].mxu1 %vm98_vm0, %v91_v17 }
  0x96   :  { %v261_v19 = vpop.xlane.xlu0 %260 }
  0x97   :  { %v284_v35 = vmul.f32 0.03125, %v261_v19 }
  0x99   :  { %v5119_v43 = vsub.f32 %v5071_v9, %v284_v35 }
  0x9a   :  { %v273_v31 = vpop.xlane.xlu0 %272 }
  0x9b   :  { %v288_v37 = vmul.f32 0.03125, %v273_v31  ;;  %v300_v52 = vmul.f32 %v5119_v43, %v5119_v43 }
  0x9d   :  { %v5122_v45 = vsub.f32 %v5071_v9, %v288_v37  ;;  %v308_v56 = vsel %vm98_vm0, %v300_v52, 0.0 }
  0x9f   :  { %v304_v53 = vmul.f32 %v5122_v45, %v5122_v45 }
  0xa1   :  { %v320_v57 = vsel %vm98_vm0, %v304_v53, 0.0  ;;  %v3704_v53 = vld [vmem:[%s5910_s3 + $0x90] sm:$0xff] }
  0xdf   :  { %v4157_v20 = vpop.f32.mrb[0].mxu1 }
  0xe0   :  { %v195_v22 = vadd.f32 %v4157_v20, %v3687_v18  ;;  %v189_v23 = vpop.f32.mrb[1].mxu1 }
  0xe2   :  { %v252_v24 = vadd.f32 %v3669_v21, %v195_v22 }
  0xe3   :  { %v4160_v25 = vpop.f32.mrb[2].mxu1 }
  0xe4   :  { %v205_v27 = vadd.f32 %v4160_v25, %v3687_v18  ;;  %v199_v28 = vpop.f32.mrb[3].mxu1  ;;  %v262_v29 = vsel %vm98_vm0, %v252_v24, 0.0 }
  0xe5   :  { %v200_v32 = vadd.f32 %v3687_v18, %v199_v28  ;;  %263 = vadd.xlane.f32.xlu1 %v262_v29 }
  0xe6   :  { %v254_v33 = vadd.f32 %v3671_v26, %v205_v27 }
  0xe7   :  { %v4163_v34 = vpop.f32.mrb[4].mxu1  ;;  %v253_v36 = vadd.f32 %v3670_v30, %v200_v32 }
  0xe8   :  { %v215_v38 = vadd.f32 %v4163_v34, %v3687_v18  ;;  %v268_v39 = vsel %vm98_vm0, %v254_v33, 0.0  ;;  %v209_v40 = vpop.f32.mrb[5].mxu1 }
  0xe9   :  { %269 = vadd.xlane.f32.xlu0 %v268_v39  ;;  %v265_v41 = vsel %vm98_vm0, %v253_v36, 0.0 }
  0xea   :  { %266 = vadd.xlane.f32.xlu1 %v265_v41  ;;  %v256_v42 = vadd.f32 %v3669_v21, %v215_v38  ;;  %v5178_v38 = vld [vmem:[%s5913_s6 + $0x2] ss:$0 sm:$0xff] }
  0xeb   :  { %v4166_v44 = vpop.f32.mrb[6].mxu1  ;;  %v3702_v41 = vld [vmem:[%s5910_s3 + $0x80] sm:$0xff] }
  0xec   :  { %v225_v46 = vadd.f32 %v4166_v44, %v3687_v18  ;;  %v219_v47 = vpop.f32.mrb[7].mxu1  ;;  %v274_v48 = vsel %vm98_vm0, %v256_v42, 0.0  ;;  %v3716_v44 = vld [vmem:[%s5909_s2 + $0x80] sm:$0xff] }
  0xed   :  { %v220_v49 = vadd.f32 %v3687_v18, %v219_v47 }
  0xee   :  { %275 = vadd.xlane.f32.xlu1 %v274_v48  ;;  %v258_v50 = vadd.f32 %v3671_v26, %v225_v46  ;;  %v5193_v46 = vld [vmem:[%s5913_s6 + $0x3] ss:$0 sm:$0xff]  ;;  %v3717_v48 = vld [vmem:[%s5909_s2 + $0x88] sm:$0xff] }
  0xef   :  { %v257_v51 = vadd.f32 %v3670_v30, %v220_v49 }
  0xf0   :  { %v280_v54 = vsel %vm98_vm0, %v258_v50, 0.0 }
  0xf1   :  { %v277_v55 = vsel %vm98_vm0, %v257_v51, 0.0 }
  0xf2   :  { %278 = vadd.xlane.f32.xlu0 %v277_v55  ;;  %281 = vadd.xlane.f32.xlu1 %v280_v54  ;;  %v3718_v54 = vld [vmem:[%s5909_s2 + $0x90] sm:$0xff] }
  0xf6   :  { %309 = vadd.xlane.f32.xlu0 %v308_v56  ;;  %321 = vadd.xlane.f32.xlu1 %v320_v57  ;;  %v3719_v57 = vld [vmem:[%s5909_s2 + $0x98] sm:$0xff] }
  0xf7   :  { %v4643_v58 = vpack.c.bf16 %v3719_v57, %v3718_v54 }
 0x172   :  { %v264_v0 = vpop.xlane.xlu1 %263 }
 0x173   :  { %v285_v1 = vmul.f32 0.03125, %v264_v0 }
 0x175   :  { %v5145_v2 = vsub.f32 %v252_v24, %v285_v1 }
 0x176   :  { %v270_v3 = vpop.xlane.xlu0 %269 }
 0x177   :  { %v287_v4 = vmul.f32 0.03125, %v270_v3  ;;  %v267_v5 = vpop.xlane.xlu1 %266  ;;  %v301_v6 = vmul.f32 %v5145_v2, %v5145_v2 }
 0x178   :  { %v286_v7 = vmul.f32 0.03125, %v267_v5 }
 0x179   :  { %v5149_v8 = vsub.f32 %v254_v33, %v287_v4  ;;  %v311_v10 = vsel %vm98_vm0, %v301_v6, 0.0 }
 0x17a   :  { %v5152_v11 = vsub.f32 %v253_v36, %v286_v7  ;;  %312 = vadd.xlane.f32.xlu0 %v311_v10 }
 0x17b   :  { %v276_v12 = vpop.xlane.xlu1 %275  ;;  %v303_v13 = vmul.f32 %v5149_v8, %v5149_v8 }
 0x17c   :  { %v289_v14 = vmul.f32 0.03125, %v276_v12  ;;  %v302_v15 = vmul.f32 %v5152_v11, %v5152_v11 }
 0x17d   :  { %v317_v16 = vsel %vm98_vm0, %v303_v13, 0.0 }
 0x17e   :  { %v5159_v17 = vsub.f32 %v256_v42, %v289_v14  ;;  %318 = vadd.xlane.f32.xlu0 %v317_v16  ;;  %v314_v18 = vsel %vm98_vm0, %v302_v15, 0.0  ;;  %v3703_v42 = vld [vmem:[%s5910_s3 + $0x88] sm:$0xff] }
 0x17f   :  { %v279_v19 = vpop.xlane.xlu0 %278  ;;  %315 = vadd.xlane.f32.xlu1 %v314_v18  ;;  %v282_v20 = vpop.xlane.xlu1 %281 }
 0x180   :  { %v290_v21 = vmul.f32 0.03125, %v279_v19  ;;  %v291_v22 = vmul.f32 0.03125, %v282_v20  ;;  %v305_v23 = vmul.f32 %v5159_v17, %v5159_v17 }
 0x182   :  { %v5164_v24 = vsub.f32 %v257_v51, %v290_v21  ;;  %v5166_v25 = vsub.f32 %v258_v50, %v291_v22  ;;  %v323_v26 = vsel %vm98_vm0, %v305_v23, 0.0  ;;  %v4639_v50 = vpack.c.bf16 %v3717_v48, %v3716_v44 }
 0x183   :  { %v310_v27 = vpop.xlane.xlu0 %309  ;;  %324 = vadd.xlane.f32.xlu1 %v323_v26  ;;  %v322_v28 = vpop.xlane.xlu1 %321 }
 0x184   :  { %v332_v29 = vmul.f32 0.03125, %v310_v27  ;;  %v336_v30 = vmul.f32 0.03125, %v322_v28  ;;  %v306_v31 = vmul.f32 %v5164_v24, %v5164_v24  ;;  %v307_v32 = vmul.f32 %v5166_v25, %v5166_v25  ;;  %4640 = vmatprep.subr.bf16.mxu0 %v4639_v50 }
 0x185   :  { %4642 = vmatpush3.bf16.msra.mxu0 %v4639_v50 }
 0x186   :  { %v340_v33 = vadd.f32 1e-05, %v332_v29  ;;  %v344_v34 = vadd.f32 1e-05, %v336_v30  ;;  %v326_v35 = vsel %vm98_vm0, %v306_v31, 0.0  ;;  %v329_v36 = vsel %vm98_vm0, %v307_v32, 0.0  ;;  %4644 = vmatprep.subr.bf16.mxu0 %v4643_v58 }
 0x187   :  { %327 = vadd.xlane.f32.xlu0 %v326_v35  ;;  %330 = vadd.xlane.f32.xlu1 %v329_v36 }
 0x188   :  { %4893 = vrsqrt.f32 %v340_v33 }
 0x189   :  { %4895 = vrsqrt.f32 %v344_v34  ;;  %4646 = vmatpush3.bf16.msra.mxu0 %v4643_v58 }
 0x192   :  { %v4894_v37 = vpop.eup %4893 }
 0x193   :  { %v4896_v39 = vpop.eup %4895  ;;  %v356_v40 = vmul.f32 %v4894_v37, %v5119_v43  ;;  %v4631_v43 = vpack.c.bf16 %v3703_v42, %v3702_v41  ;;  %v4995_v41 = vmov 0.0   ;;  %v3707_v42 = vld [vmem:[%s5915_s8 + $0x4] ss:$0 sm:$0xff] }
 0x194   :  { %v360_v47 = vmul.f32 %v4896_v39, %v5122_v45  ;;  %v3705_v45 = vld [vmem:[%s5910_s3 + $0x98] sm:$0xff] }
 0x195   :  { %v370_v49 = vmul.f32 %v5178_v38, %v356_v40  ;;  %4632 = vmatprep.subr.bf16.mxu1 %v4631_v43  ;;  %v4635_v56 = vpack.c.bf16 %v3705_v45, %v3704_v53  ;;  %v4993_v40 = vmov 0.0|0.0  }
 0x196   :  { %v374_v51 = vmul.f32 %v5178_v38, %v360_v47  ;;  %4655 = vmatprep.subr.bf16.mxu0 %v4993_v40 }
 0x197   :  { %v5202_v52 = vadd.f32 %v5193_v46, %v370_v49 }
 0x198   :  { %v5214_v55 = vadd.f32 %v5193_v46, %v374_v51 }
 0x199   :  { %4175 = vmatprep.mubr.msk.f32.mxu1 %vm98_vm0, %v5202_v52  ;;  %4206 = vmatprep.mubr.msk.f32.mxu0 %vm98_vm0, %v5202_v52 }
 0x19a   :  { %4176 = vmatmul.mubr.msk.f32.vlgmr.msra.gmra.mrb[8].mxu1 %vm98_vm0, %v5214_v55 }
 0x19b   :  { %4186 = vmatprep.mubr.msk.f32.mxu1 %vm98_vm0, %v5202_v52  ;;  %4634 = vmatpush3.bf16.msra.mxu1 %v4631_v43 }
 0x19c   :  { %4636 = vmatprep.subr.bf16.mxu1 %v4635_v56 }
 0x19f   :  { %4638 = vmatpush3.bf16.msra.mxu1 %v4635_v56 }
 0x1a0   :  { %4647 = vmatprep.subr.bf16.mxu1 %v4993_v40 }
 0x207   :  { %v313_v59 = vpop.xlane.xlu0 %312 }
 0x208   :  { %v333_v60 = vmul.f32 0.03125, %v313_v59 }
 0x20a   :  { %v341_v61 = vadd.f32 1e-05, %v333_v60 }
 0x20b   :  { %v319_v62 = vpop.xlane.xlu0 %318 }
 0x20c   :  { %4897 = vrsqrt.f32 %v341_v61  ;;  %v335_v63 = vmul.f32 0.03125, %v319_v62  ;;  %v316_v0 = vpop.xlane.xlu1 %315  ;;  %v3740_v61 = vld [vmem:[%s5910_s3 + $0x20] sm:$0xff]  ;;  %v3741_v62 = vld [vmem:[%s5910_s3 + $0x28] sm:$0xff] }
 0x20d   :  { %v334_v1 = vmul.f32 0.03125, %v316_v0 }
 0x20e   :  { %v343_v3 = vadd.f32 1e-05, %v335_v63 }
 0x20f   :  { %v342_v4 = vadd.f32 1e-05, %v334_v1 }
 0x210   :  { %4899 = vrsqrt.f32 %v343_v3  ;;  %v325_v5 = vpop.xlane.xlu1 %324 }
 0x211   :  { %4901 = vrsqrt.f32 %v342_v4  ;;  %v337_v6 = vmul.f32 0.03125, %v325_v5 }
 0x213   :  { %v345_v7 = vadd.f32 1e-05, %v337_v6  ;;  %v4663_v6 = vpack.c.bf16 %v3741_v62, %v3740_v61  ;;  %v5428_v62 = vld [vmem:[%s5908_s1] ss:$0 sm:$0xff] }
 0x214   :  { %v328_v10 = vpop.xlane.xlu0 %327  ;;  %v331_v12 = vpop.xlane.xlu1 %330 }
 0x215   :  { %4903 = vrsqrt.f32 %v345_v7  ;;  %v338_v13 = vmul.f32 0.03125, %v328_v10  ;;  %v339_v14 = vmul.f32 0.03125, %v331_v12 }
 0x216   :  { %v4898_v15 = vpop.eup %4897 }
 0x217   :  { %v357_v16 = vmul.f32 %v4898_v15, %v5145_v2  ;;  %v346_v18 = vadd.f32 1e-05, %v338_v13  ;;  %v347_v19 = vadd.f32 1e-05, %v339_v14 }
 0x219   :  { %v371_v20 = vmul.f32 %v5178_v38, %v357_v16  ;;  %4905 = vrsqrt.f32 %v346_v18 }
 0x21a   :  { %v4900_v21 = vpop.eup %4899  ;;  %4907 = vrsqrt.f32 %v347_v19  ;;  %v3699_v19 = vld [vmem:[%s5915_s8] ss:$0 sm:$0xff] }
 0x21b   :  { %v4902_v22 = vpop.eup %4901  ;;  %v5230_v23 = vadd.f32 %v5193_v46, %v371_v20  ;;  %v359_v26 = vmul.f32 %v4900_v21, %v5149_v8 }
 0x21c   :  { %v358_v27 = vmul.f32 %v4902_v22, %v5152_v11  ;;  %v3742_v22 = vld [vmem:[%s5910_s3 + $0x30] sm:$0xff] }
 0x21d   :  { %v373_v28 = vmul.f32 %v5178_v38, %v359_v26  ;;  %4187 = vmatmul.mubr.msk.f32.vlgmr.msra.gmra.mrb[10].mxu1 %vm98_vm0, %v5230_v23  ;;  %4207 = vmatmul.mubr.msk.f32.vlgmr.msra.gmra.mrb[0].mxu0 %vm98_vm0, %v5230_v23  ;;  %v3743_v26 = vld [vmem:[%s5910_s3 + $0x38] sm:$0xff] }
 0x21e   :  { %v372_v2 = vmul.f32 %v5178_v38, %v358_v27 }
 0x21f   :  { %v4904_v29 = vpop.eup %4903  ;;  %v5245_v8 = vadd.f32 %v5193_v46, %v373_v28  ;;  %v3748_v28 = vld [vmem:[%s5910_s3 + $0xa0] sm:$0xff] }
 0x220   :  { %v5241_v30 = vadd.f32 %v5193_v46, %v372_v2  ;;  %v361_v31 = vmul.f32 %v4904_v29, %v5159_v17  ;;  %v3749_v2 = vld [vmem:[%s5910_s3 + $0xa8] sm:$0xff] }
 0x222   :  { %v375_v11 = vmul.f32 %v5178_v38, %v361_v31  ;;  %4189 = vmatprep.mubr.msk.f32.mxu1 %vm98_vm0, %v5241_v30  ;;  %4209 = vmatprep.mubr.msk.f32.mxu0 %vm98_vm0, %v5241_v30  ;;  %v4667_v31 = vpack.c.bf16 %v3743_v26, %v3742_v22 }
 0x223   :  { %v4906_v32 = vpop.eup %4905  ;;  %4190 = vmatmul.mubr.msk.f32.gmra.mrb[12].mxu1 %vm98_vm0, %v5245_v8  ;;  %4210 = vmatmul.mubr.msk.f32.gmra.mrb[2].mxu0 %vm98_vm0, %v5245_v8 }
 0x224   :  { %v4908_v33 = vpop.eup %4907  ;;  %v5257_v17 = vadd.f32 %v5193_v46, %v375_v11  ;;  %v362_v34 = vmul.f32 %v4906_v32, %v5164_v24  ;;  %4192 = vmatprep.mubr.msk.f32.mxu1 %vm98_vm0, %v5214_v55  ;;  %4212 = vmatprep.mubr.msk.f32.mxu0 %vm98_vm0, %v5214_v55  ;;  %v3762_v11 = vld [vmem:[%s5909_s2 + $0xa0] sm:$0xff]  ;;  %v3763_v32 = vld [vmem:[%s5909_s2 + $0xa8] sm:$0xff] }
 0x225   :  { %v363_v35 = vmul.f32 %v4908_v33, %v5166_v25  ;;  %v4671_v33 = vpack.c.bf16 %v3749_v2, %v3748_v28 }
 0x226   :  { %v376_v36 = vmul.f32 %v5178_v38, %v362_v34  ;;  %v4679_v34 = vpack.c.bf16 %v3763_v32, %v3762_v11 }
 0x227   :  { %v377_v37 = vmul.f32 %v5178_v38, %v363_v35  ;;  %4193 = vmatmul.mubr.msk.f32.gmra.mrb[14].mxu1 %vm98_vm0, %v5257_v17  ;;  %4213 = vmatmul.mubr.msk.f32.gmra.mrb[4].mxu0 %vm98_vm0, %v5257_v17  ;;  %v3764_v35 = vld [vmem:[%s5909_s2 + $0xb0] sm:$0xff] }
 0x228   :  { %v5272_v24 = vadd.f32 %v5193_v46, %v376_v36  ;;  %v3765_v36 = vld [vmem:[%s5909_s2 + $0xb8] sm:$0xff] }
 0x229   :  { %v5275_v39 = vadd.f32 %v5193_v46, %v377_v37  ;;  %v3750_v37 = vld [vmem:[%s5910_s3 + $0xb0] sm:$0xff] }
 0x22a   :  { %4195 = vmatprep.mubr.msk.f32.mxu1 %vm98_vm0, %v5272_v24  ;;  %4215 = vmatprep.mubr.msk.f32.mxu0 %vm98_vm0, %v5272_v24 }
 0x22b   :  { %4196 = vmatmul.mubr.msk.f32.gmra.mrb[16].mxu1 %vm98_vm0, %v5275_v39  ;;  %4216 = vmatmul.mubr.msk.f32.gmra.mrb[6].mxu0 %vm98_vm0, %v5275_v39 }
 0x22c   :  { %4226 = vmatprep.mubr.msk.f32.mxu1 %vm4994_vm1, %v4995_v41  ;;  %4237 = vmatprep.mubr.msk.f32.mxu0 %vm4994_vm1, %v4995_v41 }
 0x26d   :  { %v5285_v25 = vpop.f32.mrb[8].mxu1 }
 0x26e   :  { %v477_v38 = vpop.f32.mrb[9].mxu1 }
 0x26f   :  { %v478_v29 = vadd.f32 %v3699_v19, %v477_v38  ;;  %v3751_v38 = vld [vmem:[%s5910_s3 + $0xb8] sm:$0xff] }
 0x2f0   :  { %v4188_v44 = vpop.f32.mrb[10].mxu1  ;;  %v5296_v46 = vpop.f32.mrb[0].mxu0 }
 0x2f1   :  { %v589_v47 = vadd.f32 %v4188_v44, %v3707_v42  ;;  %v583_v43 = vpop.f32.mrb[11].mxu1  ;;  %v5298_v48 = vpop.f32.mrb[1].mxu0  ;;  %v483_v44 = vadd.f32 %v5285_v25, %v3699_v19 }
 0x2f2   :  { %v584_v49 = vadd.f32 %v3707_v42, %v583_v43  ;;  %v4716_v50 = vpack.c.bf16 %v5296_v46, %v5298_v48  ;;  %v3791_v46 = vld [vmem:[%s5910_s3 + $0x58] sm:$0xff] }
 0x2f4   :  { %v4648_v53 = vpack.c.bf16 %v589_v47, %v584_v49  ;;  %v4675_v47 = vpack.c.bf16 %v3751_v38, %v3750_v37 }
 0x2f6   :  { %v4191_v45 = vpop.f32.mrb[12].mxu1  ;;  %v5308_v54 = vpop.f32.mrb[2].mxu0  ;;  %4650 = vmatpush3.bf16.xpose.msk.msra.mxu1 %vm5304_vm3, %v4648_v53 }
 0x2f7   :  { %v599_v56 = vadd.f32 %v4191_v45, %v3707_v42  ;;  %v593_v57 = vpop.f32.mrb[13].mxu1  ;;  %v5312_v58 = vpop.f32.mrb[3].mxu0  ;;  %4651 = vmatprep.subr.bf16.mxu1 %v4993_v40 }
 0x2f8   :  { %v594_v59 = vadd.f32 %v3707_v42, %v593_v57  ;;  %v4719_v60 = vpack.c.bf16 %v5308_v54, %v5312_v58  ;;  %v3812_v58 = vld [vmem:[%s5909_s2 + $0xd0] sm:$0xff] }
 0x2fa   :  { %v4652_v63 = vpack.c.bf16 %v599_v56, %v594_v59  ;;  %v4194_v0 = vpop.f32.mrb[14].mxu1  ;;  %v5323_v1 = vpop.f32.mrb[4].mxu0  ;;  %v5423_v56 = vld [vmem:[%s5908_s1 + $0x1] ss:$0 sm:$0xff] }
 0x2fb   :  { %v609_v3 = vadd.f32 %v4194_v0, %v3707_v42  ;;  %v603_v4 = vpop.f32.mrb[15].mxu1  ;;  %v5325_v5 = vpop.f32.mrb[5].mxu0 }
 0x2fc   :  { %v604_v7 = vadd.f32 %v3707_v42, %v603_v4  ;;  %v4722_v10 = vpack.c.bf16 %v5323_v1, %v5325_v5  ;;  %v3798_v1 = vld [vmem:[%s5910_s3 + $0xd0] sm:$0xff]  ;;  %v3799_v5 = vld [vmem:[%s5910_s3 + $0xd8] sm:$0xff] }
 0x2fe   :  { %v4656_v12 = vpack.c.bf16 %v609_v3, %v604_v7  ;;  %v4197_v13 = vpop.f32.mrb[16].mxu1  ;;  %v5329_v14 = vpop.f32.mrb[6].mxu0  ;;  %4654 = vmatpush3.bf16.xpose.msk.msra.mxu1 %vm5304_vm3, %v4652_v63 }
 0x2ff   :  { %v619_v15 = vadd.f32 %v4197_v13, %v3707_v42  ;;  %v613_v16 = vpop.f32.mrb[17].mxu1  ;;  %v5333_v18 = vpop.f32.mrb[7].mxu0  ;;  %4664 = vmatprep.subr.bf16.mxu1 %v4663_v6 }
 0x300   :  { %v614_v20 = vadd.f32 %v3707_v42, %v613_v16  ;;  %v4725_v21 = vpack.c.bf16 %v5329_v14, %v5333_v18  ;;  %4658 = vmatpush3.bf16.xpose.msk.msra.mxu0 %vm5304_vm3, %v4656_v12  ;;  %v4683_v42 = vpack.c.bf16 %v3765_v36, %v3764_v35  ;;  %v3810_v14 = vld [vmem:[%s5909_s2 + $0xc0] sm:$0xff]  ;;  %v3811_v18 = vld [vmem:[%s5909_s2 + $0xc8] sm:$0xff] }
 0x301   :  { %4659 = vmatprep.subr.bf16.mxu0 %v4993_v40  ;;  %v4743_v54 = vpack.c.bf16 %v3811_v18, %v3810_v14 }
 0x302   :  { %v4660_v27 = vpack.c.bf16 %v619_v15, %v614_v20 }
 0x305   :  { %4227 = vmatmul.mubr.msk.f32.vlgmr.msra.gmra.mrb[18].mxu1 %vm732_vm2, %v478_v29 }
 0x306   :  { %4666 = vmatpush3.bf16.msra.mxu1 %v4663_v6  ;;  %4248 = vmatprep.mubr.msk.f32.mxu1 %vm98_vm0, %v5202_v52  ;;  %v3753_v6 = vld [vmem:[%s5915_s8 + $0x5] ss:$0 sm:$0xff] }
 0x307   :  { %4668 = vmatprep.subr.bf16.mxu1 %v4667_v31 }
 0x308   :  { %4662 = vmatpush3.bf16.xpose.msk.msra.mxu0 %vm5304_vm3, %v4660_v27 }
 0x309   :  { %4672 = vmatprep.subr.bf16.mxu0 %v4671_v33 }
 0x30a   :  { %4670 = vmatpush3.bf16.msra.mxu1 %v4667_v31 }
 0x30b   :  { %4680 = vmatprep.subr.bf16.mxu1 %v4679_v34 }
 0x30d   :  { %4249 = vmatmul.mubr.msk.f32.vlgmr.msra.gmra.mrb[20].mxu1 %vm98_vm0, %v5214_v55 }
 0x30e   :  { %4682 = vmatpush3.bf16.msra.mxu1 %v4679_v34  ;;  %4279 = vmatprep.mubr.msk.f32.mxu1 %vm98_vm0, %v5202_v52 }
 0x30f   :  { %4238 = vmatmul.mubr.msk.f32.vlgmr.msra.gmra.mrb[8].mxu0 %vm732_vm2, %v483_v44  ;;  %4684 = vmatprep.subr.bf16.mxu1 %v4683_v42 }
 0x310   :  { %4674 = vmatpush3.bf16.msra.mxu0 %v4671_v33  ;;  %4259 = vmatprep.mubr.msk.f32.mxu0 %vm98_vm0, %v5202_v52 }
 0x311   :  { %4676 = vmatprep.subr.bf16.mxu0 %v4675_v47 }
 0x312   :  { %4686 = vmatpush3.bf16.msra.mxu1 %v4683_v42 }
 0x313   :  { %4695 = vmatprep.subr.bf16.mxu1 %v4993_v40 }
 0x314   :  { %4678 = vmatpush3.bf16.msra.mxu0 %v4675_v47 }
 0x315   :  { %4280 = vmatmul.mubr.msk.f32.vlgmr.msra.gmra.mrb[22].mxu1 %vm98_vm0, %v5230_v23  ;;  %4687 = vmatprep.subr.bf16.mxu0 %v4993_v40 }
 0x316   :  { %4282 = vmatprep.mubr.msk.f32.mxu1 %vm98_vm0, %v5241_v30 }
 0x317   :  { %4260 = vmatmul.mubr.msk.f32.vlgmr.msra.gmra.mrb[10].mxu0 %vm98_vm0, %v5230_v23 }
 0x318   :  { %4262 = vmatprep.mubr.msk.f32.mxu0 %vm98_vm0, %v5241_v30 }
 0x319   :  { %4283 = vmatmul.mubr.msk.f32.gmra.mrb[24].mxu1 %vm98_vm0, %v5245_v8 }
 0x31a   :  { %4285 = vmatprep.mubr.msk.f32.mxu1 %vm98_vm0, %v5214_v55 }
 0x31b   :  { %4263 = vmatmul.mubr.msk.f32.gmra.mrb[12].mxu0 %vm98_vm0, %v5245_v8 }
 0x31c   :  { %4265 = vmatprep.mubr.msk.f32.mxu0 %vm98_vm0, %v5214_v55 }
 0x31d   :  { %4286 = vmatmul.mubr.msk.f32.gmra.mrb[26].mxu1 %vm98_vm0, %v5257_v17 }
 0x31e   :  { %4288 = vmatprep.mubr.msk.f32.mxu1 %vm98_vm0, %v5272_v24 }
 0x31f   :  { %4266 = vmatmul.mubr.msk.f32.gmra.mrb[14].mxu0 %vm98_vm0, %v5257_v17 }
 0x320   :  { %4268 = vmatprep.mubr.msk.f32.mxu0 %vm98_vm0, %v5272_v24 }
 0x321   :  { %4289 = vmatmul.mubr.msk.f32.gmra.mrb[28].mxu1 %vm98_vm0, %v5275_v39 }
 0x322   :  { %4310 = vmatprep.mubr.msk.f32.mxu1 %vm4994_vm1, %v4995_v41 }
 0x323   :  { %4269 = vmatmul.mubr.msk.f32.gmra.mrb[16].mxu0 %vm98_vm0, %v5275_v39 }
 0x324   :  { %4299 = vmatprep.mubr.msk.f32.mxu0 %vm4994_vm1, %v4995_v41 }
 0x3d8   :  { %v814_v25 = vpop.f32.mrb[18].mxu1 }
 0x3d9   :  { %v4228_v43 = vpop.f32.mrb[19].mxu1  ;;  %v903_v57 = vmul.f32 0.35355338, %v814_v25 }
 0x3db   :  { %v5436_v3 = vadd.f32 %v5428_v62, %v903_v57 }
 0x3dd   :  { %v919_v19 = vsel %vm98_vm0, %v5436_v3, -inf }
 0x3e0   :  { %v4250_v49 = vpop.f32.mrb[20].mxu1 }
 0x3e1   :  { %v1020_v53 = vpop.f32.mrb[21].mxu1 }
 0x3e2   :  { %v899_v45 = vpop.f32.mrb[8].mxu0 }
 0x3e3   :  { %v904_v59 = vmul.f32 0.35355338, %v899_v45  ;;  %v4239_v61 = vpop.f32.mrb[9].mxu0 }
 0x3e5   :  { %v5431_v63 = vadd.f32 %v5423_v56, %v904_v59 }
 0x3e7   :  { %v922_v0 = vsel %vm98_vm0, %v5431_v63, -inf }
 0x3e8   :  { %v4281_v4 = vpop.f32.mrb[22].mxu1  ;;  %923 = vmax.xlane.f32.xlu1 %v922_v0  ;;  %v3745_v0 = vld [vmem:[%s5915_s8 + $0x1] ss:$0 sm:$0xff] }
 0x3e9   :  { %v1218_v7 = vpop.f32.mrb[23].mxu1 }
 0x3ea   :  { %v4704_v12 = vpack.c.bf16 %v4281_v4, %v1218_v7  ;;  %v4261_v13 = vpop.f32.mrb[10].mxu0  ;;  %v1021_v7 = vadd.f32 %v3745_v0, %v1020_v53 }
 0x3eb   :  { %v1114_v15 = vadd.f32 %v4261_v13, %v3753_v6  ;;  %v1108_v16 = vpop.f32.mrb[11].mxu0 }
 0x3ec   :  { %v1109_v20 = vadd.f32 %v3753_v6, %v1108_v16  ;;  %v4284_v22 = vpop.f32.mrb[24].mxu1  ;;  %920 = vmax.xlane.f32.xlu1 %v919_v19 }
 0x3ed   :  { %v1228_v26 = vpop.f32.mrb[25].mxu1 }
 0x3ee   :  { %v4688_v27 = vpack.c.bf16 %v1114_v15, %v1109_v20  ;;  %v4707_v28 = vpack.c.bf16 %v4284_v22, %v1228_v26  ;;  %v4264_v2 = vpop.f32.mrb[12].mxu0 }
 0x3ef   :  { %v1124_v29 = vadd.f32 %v4264_v2, %v3753_v6  ;;  %v1118_v31 = vpop.f32.mrb[13].mxu0 }
 0x3f0   :  { %v1119_v11 = vadd.f32 %v3753_v6, %v1118_v31  ;;  %v4287_v32 = vpop.f32.mrb[26].mxu1  ;;  %4690 = vmatpush3.bf16.xpose.msk.msra.mxu0 %vm5304_vm3, %v4688_v27 }
 0x3f1   :  { %v1238_v33 = vpop.f32.mrb[27].mxu1  ;;  %4691 = vmatprep.subr.bf16.mxu0 %v4993_v40 }
 0x3f2   :  { %v4692_v34 = vpack.c.bf16 %v1124_v29, %v1119_v11  ;;  %v4710_v35 = vpack.c.bf16 %v4287_v32, %v1238_v33  ;;  %v4267_v36 = vpop.f32.mrb[14].mxu0 }
 0x3f3   :  { %v1134_v37 = vadd.f32 %v4267_v36, %v3753_v6  ;;  %v1128_v38 = vpop.f32.mrb[15].mxu0 }
 0x3f4   :  { %v1129_v42 = vadd.f32 %v3753_v6, %v1128_v38  ;;  %v4290_v44 = vpop.f32.mrb[28].mxu1 }
 0x3f5   :  { %v1248_v47 = vpop.f32.mrb[29].mxu1 }
 0x3f6   :  { %v4696_v25 = vpack.c.bf16 %v1134_v37, %v1129_v42  ;;  %v4713_v43 = vpack.c.bf16 %v4290_v44, %v1248_v47  ;;  %v4270_v45 = vpop.f32.mrb[16].mxu0 }
 0x3f7   :  { %v1144_v57 = vadd.f32 %v4270_v45, %v3753_v6  ;;  %v1138_v59 = vpop.f32.mrb[17].mxu0 }
 0x3f8   :  { %v1139_v61 = vadd.f32 %v3753_v6, %v1138_v59  ;;  %4694 = vmatpush3.bf16.xpose.msk.msra.mxu0 %vm5304_vm3, %v4692_v34  ;;  %4698 = vmatpush3.bf16.xpose.msk.msra.mxu1 %vm5304_vm3, %v4696_v25  ;;  %v1026_v6 = vadd.f32 %v4250_v49, %v3745_v0 }
 0x3f9   :  { %4699 = vmatprep.subr.bf16.mxu1 %v4993_v40  ;;  %4703 = vmatprep.subr.bf16.mxu0 %v4993_v40 }
 0x3fa   :  { %v4700_v4 = vpack.c.bf16 %v1144_v57, %v1139_v61 }
 0x3ff   :  { %4300 = vmatmul.mubr.msk.f32.vlgmr.msra.gmra.mrb[18].mxu0 %vm732_vm2, %v1021_v7  ;;  %v3796_v7 = vld [vmem:[%s5910_s3 + $0xc0] sm:$0xff] }
 0x400   :  { %4702 = vmatpush3.bf16.xpose.msk.msra.mxu1 %vm5304_vm3, %v4700_v4  ;;  %4705 = vmatpush3.bf16.msra.mxu0 %v4704_v12 }
 0x401   :  { %4706 = vmatprep.subr.bf16.mxu0 %v4993_v40  ;;  %4709 = vmatprep.subr.bf16.mxu1 %v4993_v40 }
 0x402   :  { %4321 = vmatprep.mubr.msk.f32.mxu0 %vm4994_vm1, %v4995_v41 }
 0x404   :  { %4708 = vmatpush3.bf16.msra.mxu0 %v4707_v28 }
 0x405   :  { %4715 = vmatprep.subr.bf16.mxu0 %v4993_v40 }
 0x407   :  { %4311 = vmatmul.mubr.msk.f32.vlgmr.msra.gmra.mrb[30].mxu1 %vm732_vm2, %v1026_v6  ;;  %v3797_v6 = vld [vmem:[%s5910_s3 + $0xc8] sm:$0xff] }
 0x408   :  { %4711 = vmatpush3.bf16.msra.mxu1 %v4710_v35  ;;  %4332 = vmatprep.mubr.msk.f32.mxu1 %vm4994_vm1, %v4995_v41 }
 0x409   :  { %4712 = vmatprep.subr.bf16.mxu1 %v4993_v40 }
 0x40c   :  { %4714 = vmatpush3.bf16.msra.mxu1 %v4713_v43 }
 0x40d   :  { %4721 = vmatprep.subr.bf16.mxu1 %v4993_v40 }
 0x475   :  { %v924_v53 = vpop.xlane.xlu1 %923 }
 0x476   :  { %v926_v12 = vsub.f32 %v5431_v63, %v924_v53 }
 0x478   :  { %v929_v13 = vmul.f32 1.442695, %v926_v12 }
 0x479   :  { %v921_v15 = vpop.xlane.xlu1 %920 }
 0x47a   :  { %4909 = vpow2.f32 %v929_v13  ;;  %v925_v49 = vsub.f32 %v5436_v3, %v921_v15  ;;  %v4735_v13 = vpack.c.bf16 %v3797_v6, %v3796_v7 }
 0x47c   :  { %v927_v16 = vmul.f32 1.442695, %v925_v49  ;;  %v3788_v49 = vld [vmem:[%s5910_s3 + $0x40] sm:$0xff] }
 0x47e   :  { %4911 = vpow2.f32 %v927_v16  ;;  %v3789_v16 = vld [vmem:[%s5910_s3 + $0x48] sm:$0xff] }
 0x484   :  { %v4910_v19 = vpop.eup %4909 }
 0x485   :  { %v934_v20 = vsel %vm98_vm0, %v4910_v19, 0.0 }
 0x486   :  { %935 = vadd.xlane.f32.xlu1 %v934_v20  ;;  %v4727_v20 = vpack.c.bf16 %v3789_v16, %v3788_v49 }
 0x488   :  { %v5471_v22 = vpop.eup %4911 }
 0x489   :  { %v931_v26 = vsel %vm98_vm0, %v5471_v22, 0.0 }
 0x48a   :  { %932 = vadd.xlane.f32.xlu1 %v931_v26 }
 0x4d2   :  { %v1338_v27 = vpop.f32.mrb[18].mxu0 }
 0x4d3   :  { %v4301_v28 = vpop.f32.mrb[19].mxu0  ;;  %v1427_v2 = vmul.f32 0.35355338, %v1338_v27  ;;  %v4739_v27 = vpack.c.bf16 %v3799_v5, %v3798_v1 }
 0x4d4   :  { %v3790_v28 = vld [vmem:[%s5910_s3 + $0x50] sm:$0xff] }
 0x4d5   :  { %v1429_v32 = vadd.f32 %v5428_v62, %v1427_v2 }
 0x4d7   :  { %v1431_v33 = vsel %vm98_vm0, %v1429_v32, -inf }
 0x4da   :  { %v1423_v63 = vpop.f32.mrb[30].mxu1 }
 0x4db   :  { %v1428_v29 = vmul.f32 0.35355338, %v1423_v63  ;;  %v4312_v31 = vpop.f32.mrb[31].mxu1 }
 0x4dd   :  { %v1430_v3 = vadd.f32 %v5423_v56, %v1428_v29 }
 0x4df   :  { %v1434_v11 = vsel %vm98_vm0, %v1430_v3, -inf }
 0x4e0   :  { %1435 = vmax.xlane.f32.xlu0 %v1434_v11 }
 0x4e4   :  { %1432 = vmax.xlane.f32.xlu0 %v1431_v33 }
 0x513   :  { %v936_v57 = vpop.xlane.xlu1 %935 }
 0x517   :  { %v933_v61 = vpop.xlane.xlu1 %932 }
 0x56d   :  { %v1436_v34 = vpop.xlane.xlu0 %1435 }
 0x56e   :  { %v1438_v35 = vsub.f32 %v1430_v3, %v1436_v34  ;;  %v3801_v34 = vld [vmem:[%s5915_s8 + $0x6] ss:$0 sm:$0xff] }
 0x570   :  { %v1441_v36 = vmul.f32 1.442695, %v1438_v35 }
 0x571   :  { %v1433_v37 = vpop.xlane.xlu0 %1432 }
 0x572   :  { %4913 = vpow2.f32 %v1441_v36  ;;  %v1437_v38 = vsub.f32 %v1429_v32, %v1433_v37 }
 0x574   :  { %v1439_v42 = vmul.f32 1.442695, %v1437_v38 }
 0x576   :  { %4915 = vpow2.f32 %v1439_v42 }
 0x57c   :  { %v4914_v44 = vpop.eup %4913 }
 0x57d   :  { %v1446_v47 = vsel %vm98_vm0, %v4914_v44, 0.0 }
 0x57e   :  { %1447 = vadd.xlane.f32.xlu0 %v1446_v47 }
 0x580   :  { %v4916_v25 = vpop.eup %4915 }
 0x581   :  { %v1443_v43 = vsel %vm98_vm0, %v4916_v25, 0.0 }
 0x582   :  { %1444 = vadd.xlane.f32.xlu0 %v1443_v43 }
 0x60b   :  { %v1448_v45 = vpop.xlane.xlu0 %1447 }
 0x60c   :  { %4917 = vrcp.f32 %v1448_v45 }
 0x60f   :  { %v1445_v59 = vpop.xlane.xlu0 %1444 }
 0x610   :  { %4919 = vrcp.f32 %v1445_v59 }
 0x611   :  { %4921 = vrcp.f32 %v936_v57 }
 0x612   :  { %4923 = vrcp.f32 %v933_v61 }
 0x616   :  { %v4918_v0 = vpop.eup %4917 }
 0x617   :  { %v1452_v4 = vmul.f32 %v4918_v0, %v4914_v44 }
 0x619   :  { %4333 = vmatmul.mubr.msk.f32.vlgmr.msra.gmra.mrb[32].mxu1 %vm98_vm0, %v1452_v4 }
 0x61a   :  { %v4920_v53 = vpop.eup %4919  ;;  %4723 = vmatpush3.bf16.msra.mxu1 %v4722_v10  ;;  %4354 = vmatprep.mubr.msk.f32.mxu1 %vm4994_vm1, %v4995_v41 }
 0x61b   :  { %v1451_v12 = vmul.f32 %v4920_v53, %v4916_v25  ;;  %4724 = vmatprep.subr.bf16.mxu1 %v4993_v40  ;;  %v4922_v15 = vpop.eup %4921 }
 0x61c   :  { %v940_v10 = vmul.f32 %v4922_v15, %v4910_v19  ;;  %v4924_v26 = vpop.eup %4923 }
 0x61d   :  { %4322 = vmatmul.mubr.msk.f32.vlgmr.msra.gmra.mrb[20].mxu0 %vm98_vm0, %v1451_v12  ;;  %v939_v48 = vmul.f32 %v4924_v26, %v5471_v22 }
 0x61e   :  { %4717 = vmatpush3.bf16.msra.mxu0 %v4716_v50  ;;  %4726 = vmatpush3.bf16.msra.mxu1 %v4725_v21  ;;  %v4731_v50 = vpack.c.bf16 %v3791_v46, %v3790_v28 }
 0x61f   :  { %4718 = vmatprep.subr.bf16.mxu0 %v4993_v40  ;;  %4736 = vmatprep.subr.bf16.mxu1 %v4735_v13 }
 0x620   :  { %4343 = vmatprep.mubr.msk.f32.mxu0 %vm4994_vm1, %v4995_v41 }
 0x621   :  { %4355 = vmatmul.mubr.msk.f32.vlgmr.msra.gmra.mrb[34].mxu1 %vm98_vm0, %v940_v10  ;;  %v3793_v10 = vld [vmem:[%s5915_s8 + $0x2] ss:$0 sm:$0xff] }
 0x622   :  { %4720 = vmatpush3.bf16.msra.mxu0 %v4719_v60  ;;  %4738 = vmatpush3.bf16.msra.mxu1 %v4735_v13  ;;  %v3813_v60 = vld [vmem:[%s5909_s2 + $0xd8] sm:$0xff] }
 0x623   :  { %4376 = vmatprep.mubr.msk.f32.mxu1 %vm98_vm0, %v5202_v52  ;;  %4728 = vmatprep.subr.bf16.mxu0 %v4727_v20  ;;  %v4747_v21 = vpack.c.bf16 %v3813_v60, %v3812_v58 }
 0x624   :  { %4740 = vmatprep.subr.bf16.mxu1 %v4739_v27 }
 0x625   :  { %4344 = vmatmul.mubr.msk.f32.vlgmr.msra.gmra.mrb[22].mxu0 %vm98_vm0, %v939_v48 }
 0x626   :  { %4730 = vmatpush3.bf16.msra.mxu0 %v4727_v20  ;;  %4365 = vmatprep.mubr.msk.f32.mxu0 %vm98_vm0, %v5202_v52 }
 0x627   :  { %4742 = vmatpush3.bf16.msra.mxu1 %v4739_v27  ;;  %4732 = vmatprep.subr.bf16.mxu0 %v4731_v50 }
 0x628   :  { %4751 = vmatprep.subr.bf16.mxu1 %v4993_v40 }
 0x62a   :  { %4377 = vmatmul.mubr.msk.f32.vlgmr.msra.gmra.mrb[36].mxu1 %vm98_vm0, %v5230_v23  ;;  %4734 = vmatpush3.bf16.msra.mxu0 %v4731_v50 }
 0x62b   :  { %4379 = vmatprep.mubr.msk.f32.mxu1 %vm98_vm0, %v5241_v30  ;;  %4744 = vmatprep.subr.bf16.mxu0 %v4743_v54 }
 0x62d   :  { %4366 = vmatmul.mubr.msk.f32.vlgmr.msra.gmra.mrb[24].mxu0 %vm98_vm0, %v5214_v55 }
 0x62e   :  { %4380 = vmatmul.mubr.msk.f32.gmra.mrb[38].mxu1 %vm98_vm0, %v5245_v8  ;;  %4746 = vmatpush3.bf16.msra.mxu0 %v4743_v54 }
 0x62f   :  { %4382 = vmatprep.mubr.msk.f32.mxu1 %vm98_vm0, %v5214_v55  ;;  %4396 = vmatprep.mubr.msk.f32.mxu0 %vm98_vm0, %v5202_v52 }
 0x630   :  { %4748 = vmatprep.subr.bf16.mxu0 %v4747_v21 }
 0x632   :  { %4383 = vmatmul.mubr.msk.f32.gmra.mrb[40].mxu1 %vm98_vm0, %v5257_v17  ;;  %4750 = vmatpush3.bf16.msra.mxu0 %v4747_v21 }
 0x633   :  { %4385 = vmatprep.mubr.msk.f32.mxu1 %vm98_vm0, %v5272_v24  ;;  %4759 = vmatprep.subr.bf16.mxu0 %v4993_v40 }
 0x635   :  { %4397 = vmatmul.mubr.msk.f32.vlgmr.msra.gmra.mrb[26].mxu0 %vm98_vm0, %v5230_v23 }
 0x636   :  { %4386 = vmatmul.mubr.msk.f32.gmra.mrb[42].mxu1 %vm98_vm0, %v5275_v39  ;;  %4399 = vmatprep.mubr.msk.f32.mxu0 %vm98_vm0, %v5241_v30 }
 0x637   :  { %4416 = vmatprep.mubr.msk.f32.mxu1 %vm4994_vm1, %v4995_v41 }
 0x639   :  { %4400 = vmatmul.mubr.msk.f32.gmra.mrb[28].mxu0 %vm98_vm0, %v5245_v8 }
 0x63a   :  { %4402 = vmatprep.mubr.msk.f32.mxu0 %vm98_vm0, %v5214_v55 }
 0x63d   :  { %4403 = vmatmul.mubr.msk.f32.gmra.mrb[30].mxu0 %vm98_vm0, %v5257_v17 }
 0x63e   :  { %4405 = vmatprep.mubr.msk.f32.mxu0 %vm98_vm0, %v5272_v24 }
 0x641   :  { %4406 = vmatmul.mubr.msk.f32.gmra.mrb[32].mxu0 %vm98_vm0, %v5275_v39 }
 0x642   :  { %4427 = vmatprep.mubr.msk.f32.mxu0 %vm4994_vm1, %v4995_v41 }
 0x6ec   :  { %v1595_v19 = vpop.f32.mrb[32].mxu1 }
 0x6ed   :  { %v4334_v22 = vpop.f32.mrb[33].mxu1 }
 0x6f0   :  { %v1522_v63 = vpop.f32.mrb[20].mxu0 }
 0x6f1   :  { %v4323_v2 = vpop.f32.mrb[21].mxu0 }
 0x6f4   :  { %v1741_v29 = vpop.f32.mrb[34].mxu1 }
 0x6f5   :  { %v5582_v31 = vadd.f32 %v1741_v29, %v1595_v19  ;;  %v4356_v3 = vpop.f32.mrb[35].mxu1 }
 0x6f8   :  { %v1668_v11 = vpop.f32.mrb[22].mxu0 }
 0x6f9   :  { %v5584_v32 = vadd.f32 %v1668_v11, %v1522_v63  ;;  %v4345_v33 = vpop.f32.mrb[23].mxu0 }
 0x6fd   :  { %v4378_v35 = vpop.f32.mrb[36].mxu1 }
 0x6fe   :  { %v1918_v36 = vadd.f32 %v4378_v35, %v3801_v34  ;;  %v1912_v37 = vpop.f32.mrb[37].mxu1 }
 0x6ff   :  { %v1913_v38 = vadd.f32 %v3801_v34, %v1912_v37 }
 0x700   :  { %v4367_v42 = vpop.f32.mrb[24].mxu0 }
 0x701   :  { %v4752_v44 = vpack.c.bf16 %v1918_v36, %v1913_v38  ;;  %v4381_v47 = vpop.f32.mrb[38].mxu1  ;;  %v1824_v25 = vpop.f32.mrb[25].mxu0  ;;  %v1830_v58 = vadd.f32 %v4367_v42, %v3793_v10 }
 0x702   :  { %v1928_v43 = vadd.f32 %v4381_v47, %v3801_v34  ;;  %v1922_v45 = vpop.f32.mrb[39].mxu1  ;;  %v1825_v28 = vadd.f32 %v3793_v10, %v1824_v25  ;;  %v3844_v10 = vld [vmem:[%s5910_s3 + $0xf0] sm:$0xff] }
 0x703   :  { %v1923_v57 = vadd.f32 %v3801_v34, %v1922_v45  ;;  %4754 = vmatpush3.bf16.xpose.msk.msra.mxu1 %vm5304_vm3, %v4752_v44  ;;  %v3834_v45 = vld [vmem:[%s5910_s3 + $0x60] sm:$0xff] }
 0x704   :  { %4755 = vmatprep.subr.bf16.mxu1 %v4993_v40 }
 0x705   :  { %v4756_v59 = vpack.c.bf16 %v1928_v43, %v1923_v57  ;;  %v4384_v61 = vpop.f32.mrb[40].mxu1  ;;  %v3835_v57 = vld [vmem:[%s5910_s3 + $0x68] sm:$0xff] }
 0x706   :  { %v1938_v0 = vadd.f32 %v4384_v61, %v3801_v34  ;;  %v1932_v4 = vpop.f32.mrb[41].mxu1  ;;  %v3842_v61 = vld [vmem:[%s5910_s3 + $0xe0] sm:$0xff] }
 0x707   :  { %v1933_v7 = vadd.f32 %v3801_v34, %v1932_v4 }
 0x708   :  { %v4398_v6 = vpop.f32.mrb[26].mxu0 }
 0x709   :  { %v4760_v53 = vpack.c.bf16 %v1938_v0, %v1933_v7  ;;  %v4387_v12 = vpop.f32.mrb[42].mxu1  ;;  %v2022_v13 = vpop.f32.mrb[27].mxu0  ;;  %v3843_v0 = vld [vmem:[%s5910_s3 + $0xe8] sm:$0xff] }
 0x70a   :  { %v1948_v15 = vadd.f32 %v4387_v12, %v3801_v34  ;;  %v1942_v49 = vpop.f32.mrb[43].mxu1  ;;  %v4768_v16 = vpack.c.bf16 %v4398_v6, %v2022_v13  ;;  %v4787_v4 = vpack.c.bf16 %v3843_v0, %v3842_v61  ;;  %v3837_v12 = vld [vmem:[%s5910_s3 + $0x78] sm:$0xff] }
 0x70b   :  { %v1943_v1 = vadd.f32 %v3801_v34, %v1942_v49  ;;  %4758 = vmatpush3.bf16.xpose.msk.msra.mxu1 %vm5304_vm3, %v4756_v59  ;;  %4762 = vmatpush3.bf16.xpose.msk.msra.mxu0 %vm5304_vm3, %v4760_v53  ;;  %v4779_v59 = vpack.c.bf16 %v3835_v57, %v3834_v45  ;;  %v3836_v53 = vld [vmem:[%s5910_s3 + $0x70] sm:$0xff] }
 0x70c   :  { %v4401_v5 = vpop.f32.mrb[28].mxu0  ;;  %4763 = vmatprep.subr.bf16.mxu0 %v4993_v40  ;;  %4767 = vmatprep.subr.bf16.mxu1 %v4993_v40  ;;  %v4783_v49 = vpack.c.bf16 %v3837_v12, %v3836_v53 }
 0x70d   :  { %v4764_v20 = vpack.c.bf16 %v1948_v15, %v1943_v1  ;;  %v2032_v26 = vpop.f32.mrb[29].mxu0  ;;  %v3857_v1 = vld [vmem:[%s5909_s2 + $0xe8] sm:$0xff] }
 0x70e   :  { %v4771_v27 = vpack.c.bf16 %v4401_v5, %v2032_v26  ;;  %v3858_v26 = vld [vmem:[%s5909_s2 + $0xf0] sm:$0xff] }
 0x710   :  { %v4404_v46 = vpop.f32.mrb[30].mxu0 }
 0x711   :  { %v2042_v48 = vpop.f32.mrb[31].mxu0 }
 0x712   :  { %v4774_v50 = vpack.c.bf16 %v4404_v46, %v2042_v48  ;;  %4417 = vmatmul.mubr.msk.f32.vlgmr.msra.gmra.mrb[44].mxu1 %vm732_vm2, %v1825_v28 }
 0x713   :  { %4766 = vmatpush3.bf16.xpose.msk.msra.mxu0 %vm5304_vm3, %v4764_v20  ;;  %4769 = vmatpush3.bf16.msra.mxu1 %v4768_v16  ;;  %v3856_v16 = vld [vmem:[%s5909_s2 + $0xe0] sm:$0xff]  ;;  %v3845_v20 = vld [vmem:[%s5910_s3 + $0xf8] sm:$0xff] }
 0x714   :  { %v4407_v14 = vpop.f32.mrb[32].mxu0  ;;  %4770 = vmatprep.subr.bf16.mxu1 %v4993_v40  ;;  %4773 = vmatprep.subr.bf16.mxu0 %v4993_v40  ;;  %v4795_v5 = vpack.c.bf16 %v3857_v1, %v3856_v16  ;;  %v4791_v48 = vpack.c.bf16 %v3845_v20, %v3844_v10 }
 0x715   :  { %v2052_v18 = vpop.f32.mrb[33].mxu0  ;;  %4438 = vmatprep.mubr.msk.f32.mxu1 %vm4994_vm1, %v4995_v41 }
 0x716   :  { %v4777_v54 = vpack.c.bf16 %v4407_v14, %v2052_v18 }
 0x717   :  { %4772 = vmatpush3.bf16.msra.mxu1 %v4771_v27  ;;  %v3859_v27 = vld [vmem:[%s5909_s2 + $0xf8] sm:$0xff] }
 0x718   :  { %4780 = vmatprep.subr.bf16.mxu1 %v4779_v59 }
 0x71a   :  { %4428 = vmatmul.mubr.msk.f32.vlgmr.msra.gmra.mrb[34].mxu0 %vm732_vm2, %v1830_v58 }
 0x71b   :  { %4775 = vmatpush3.bf16.msra.mxu0 %v4774_v50  ;;  %4449 = vmatprep.mubr.msk.f32.mxu0 %vm4994_vm1, %v4995_v41  ;;  %v4799_v50 = vpack.c.bf16 %v3859_v27, %v3858_v26 }
 0x71c   :  { %4776 = vmatprep.subr.bf16.mxu0 %v4993_v40 }
 0x71f   :  { %4778 = vmatpush3.bf16.msra.mxu0 %v4777_v54 }
 0x720   :  { %4788 = vmatprep.subr.bf16.mxu0 %v4787_v4 }
 0x7e5   :  { %v2142_v60 = vpop.f32.mrb[44].mxu1 }
 0x7e6   :  { %v2231_v21 = vmul.f32 0.35355338, %v2142_v60  ;;  %v4418_v19 = vpop.f32.mrb[45].mxu1 }
 0x7e8   :  { %v2233_v22 = vadd.f32 %v5428_v62, %v2231_v21 }
 0x7ea   :  { %v2235_v63 = vsel %vm98_vm0, %v2233_v22, -inf }
 0x7eb   :  { %2236 = vmax.xlane.f32.xlu1 %v2235_v63 }
 0x7ed   :  { %v2227_v2 = vpop.f32.mrb[34].mxu0 }
 0x7ee   :  { %v2232_v29 = vmul.f32 0.35355338, %v2227_v2  ;;  %v4429_v3 = vpop.f32.mrb[35].mxu0 }
 0x7f0   :  { %v2234_v11 = vadd.f32 %v5423_v56, %v2232_v29 }
 0x7f2   :  { %v2238_v33 = vsel %vm98_vm0, %v2234_v11, -inf }
 0x7f3   :  { %2239 = vmax.xlane.f32.xlu0 %v2238_v33 }
 0x878   :  { %v2237_v34 = vpop.xlane.xlu1 %2236 }
 0x879   :  { %v2241_v35 = vsub.f32 %v2233_v22, %v2237_v34 }
 0x87b   :  { %v2243_v36 = vmul.f32 1.442695, %v2241_v35 }
 0x87d   :  { %4925 = vpow2.f32 %v2243_v36 }
 0x880   :  { %v2240_v37 = vpop.xlane.xlu0 %2239 }
 0x881   :  { %v2242_v38 = vsub.f32 %v2234_v11, %v2240_v37 }
 0x883   :  { %v2245_v42 = vmul.f32 1.442695, %v2242_v38 }
 0x885   :  { %4927 = vpow2.f32 %v2245_v42 }
 0x887   :  { %v4926_v44 = vpop.eup %4925 }
 0x888   :  { %v2247_v47 = vsel %vm98_vm0, %v4926_v44, 0.0 }
 0x889   :  { %2248 = vadd.xlane.f32.xlu1 %v2247_v47 }
 0x88f   :  { %v4928_v25 = vpop.eup %4927 }
 0x890   :  { %v2250_v43 = vsel %vm98_vm0, %v4928_v25, 0.0 }
 0x891   :  { %2251 = vadd.xlane.f32.xlu0 %v2250_v43 }
 0x916   :  { %v2249_v7 = vpop.xlane.xlu1 %2248 }
 0x917   :  { %4929 = vrcp.f32 %v2249_v7  ;;  %v3839_v7 = vld [vmem:[%s5915_s8 + $0x3] ss:$0 sm:$0xff] }
 0x91e   :  { %v2252_v6 = vpop.xlane.xlu0 %2251 }
 0x91f   :  { %4931 = vrcp.f32 %v2252_v6 }
 0x921   :  { %v4930_v13 = vpop.eup %4929 }
 0x922   :  { %v2255_v15 = vmul.f32 %v4930_v13, %v4926_v44 }
 0x924   :  { %4439 = vmatmul.mubr.msk.f32.vlgmr.msra.gmra.mrb[46].mxu1 %vm98_vm0, %v2255_v15 }
 0x925   :  { %4782 = vmatpush3.bf16.msra.mxu1 %v4779_v59  ;;  %4460 = vmatprep.mubr.msk.f32.mxu1 %vm98_vm0, %v5202_v52 }
 0x926   :  { %4784 = vmatprep.subr.bf16.mxu1 %v4783_v49 }
 0x929   :  { %v4932_v28 = vpop.eup %4931  ;;  %4786 = vmatpush3.bf16.msra.mxu1 %v4783_v49 }
 0x92a   :  { %v2256_v46 = vmul.f32 %v4932_v28, %v4928_v25  ;;  %4796 = vmatprep.subr.bf16.mxu1 %v4795_v5 }
 0x92c   :  { %4461 = vmatmul.mubr.msk.f32.vlgmr.msra.gmra.mrb[48].mxu1 %vm98_vm0, %v5214_v55  ;;  %4450 = vmatmul.mubr.msk.f32.vlgmr.msra.gmra.mrb[36].mxu0 %vm98_vm0, %v2256_v46 }
 0x92d   :  { %4790 = vmatpush3.bf16.msra.mxu0 %v4787_v4  ;;  %4798 = vmatpush3.bf16.msra.mxu1 %v4795_v5 }
 0x92e   :  { %4491 = vmatprep.mubr.msk.f32.mxu1 %vm98_vm0, %v5202_v52  ;;  %4471 = vmatprep.mubr.msk.f32.mxu0 %vm98_vm0, %v5202_v52 }
 0x92f   :  { %4792 = vmatprep.subr.bf16.mxu0 %v4791_v48  ;;  %4800 = vmatprep.subr.bf16.mxu1 %v4799_v50 }
 0x931   :  { %4794 = vmatpush3.bf16.msra.mxu0 %v4791_v48  ;;  %4802 = vmatpush3.bf16.msra.mxu1 %v4799_v50 }
 0x932   :  { %4803 = vmatprep.subr.bf16.mxu0 %v4993_v40  ;;  %4811 = vmatprep.subr.bf16.mxu1 %v4993_v40 }
 0x934   :  { %4472 = vmatmul.mubr.msk.f32.vlgmr.msra.gmra.mrb[38].mxu0 %vm98_vm0, %v5230_v23  ;;  %4492 = vmatmul.mubr.msk.f32.vlgmr.msra.gmra.mrb[50].mxu1 %vm98_vm0, %v5230_v23 }
 0x935   :  { %4474 = vmatprep.mubr.msk.f32.mxu0 %vm98_vm0, %v5241_v30  ;;  %4494 = vmatprep.mubr.msk.f32.mxu1 %vm98_vm0, %v5241_v30 }
 0x938   :  { %4475 = vmatmul.mubr.msk.f32.gmra.mrb[40].mxu0 %vm98_vm0, %v5245_v8  ;;  %4495 = vmatmul.mubr.msk.f32.gmra.mrb[52].mxu1 %vm98_vm0, %v5245_v8 }
 0x939   :  { %4477 = vmatprep.mubr.msk.f32.mxu0 %vm98_vm0, %v5214_v55  ;;  %4497 = vmatprep.mubr.msk.f32.mxu1 %vm98_vm0, %v5214_v55 }
 0x93c   :  { %4478 = vmatmul.mubr.msk.f32.gmra.mrb[42].mxu0 %vm98_vm0, %v5257_v17  ;;  %4498 = vmatmul.mubr.msk.f32.gmra.mrb[54].mxu1 %vm98_vm0, %v5257_v17 }
 0x93d   :  { %4480 = vmatprep.mubr.msk.f32.mxu0 %vm98_vm0, %v5272_v24  ;;  %4500 = vmatprep.mubr.msk.f32.mxu1 %vm98_vm0, %v5272_v24 }
 0x940   :  { %4481 = vmatmul.mubr.msk.f32.gmra.mrb[44].mxu0 %vm98_vm0, %v5275_v39  ;;  %4501 = vmatmul.mubr.msk.f32.gmra.mrb[56].mxu1 %vm98_vm0, %v5275_v39  ;;  %v3847_v39 = vld [vmem:[%s5915_s8 + $0x7] ss:$0 sm:$0xff] }
 0x941   :  { %4511 = vmatprep.mubr.msk.f32.mxu0 %vm4994_vm1, %v4995_v41  ;;  %4522 = vmatprep.mubr.msk.f32.mxu1 %vm4994_vm1, %v4995_v41 }
 0x9f7   :  { %v2326_v52 = vpop.f32.mrb[46].mxu1 }
 0x9f8   :  { %v5699_v55 = vadd.f32 %v2326_v52, %v5584_v32  ;;  %v4440_v23 = vpop.f32.mrb[47].mxu1 }
 0x9ff   :  { %v4462_v30 = vpop.f32.mrb[48].mxu1  ;;  %v2399_v8 = vpop.f32.mrb[36].mxu0 }
 0xa00   :  { %v5702_v17 = vadd.f32 %v2399_v8, %v5582_v31  ;;  %v2484_v24 = vpop.f32.mrb[49].mxu1  ;;  %v4451_v14 = vpop.f32.mrb[37].mxu0  ;;  %v2490_v12 = vadd.f32 %v4462_v30, %v3839_v7 }
 0xa01   :  { %v2485_v53 = vadd.f32 %v3839_v7, %v2484_v24 }
 0xa07   :  { %v4473_v18 = vpop.f32.mrb[38].mxu0  ;;  %v4493_v54 = vpop.f32.mrb[50].mxu1 }
 0xa08   :  { %v2578_v58 = vadd.f32 %v4473_v18, %v3847_v39  ;;  %v2572_v60 = vpop.f32.mrb[39].mxu0  ;;  %v2682_v21 = vpop.f32.mrb[51].mxu1 }
 0xa09   :  { %v2573_v19 = vadd.f32 %v3847_v39, %v2572_v60  ;;  %v4820_v32 = vpack.c.bf16 %v4493_v54, %v2682_v21  ;;  %v3880_v60 = vld [vmem:[%s5913_s6 + $0x4] ss:$0 sm:$0xff] }
 0xa0b   :  { %v4804_v22 = vpack.c.bf16 %v2578_v58, %v2573_v19  ;;  %v4476_v63 = vpop.f32.mrb[40].mxu0  ;;  %v4496_v2 = vpop.f32.mrb[52].mxu1 }
 0xa0c   :  { %v2588_v29 = vadd.f32 %v4476_v63, %v3847_v39  ;;  %v2582_v3 = vpop.f32.mrb[41].mxu0  ;;  %v2692_v31 = vpop.f32.mrb[53].mxu1 }
 0xa0d   :  { %v2583_v11 = vadd.f32 %v3847_v39, %v2582_v3  ;;  %v4823_v33 = vpack.c.bf16 %v4496_v2, %v2692_v31  ;;  %4806 = vmatpush3.bf16.xpose.msk.msra.mxu0 %vm5304_vm3, %v4804_v22 }
 0xa0e   :  { %4807 = vmatprep.subr.bf16.mxu0 %v4993_v40 }
 0xa0f   :  { %v4808_v34 = vpack.c.bf16 %v2588_v29, %v2583_v11  ;;  %v4479_v35 = vpop.f32.mrb[42].mxu0  ;;  %v4499_v36 = vpop.f32.mrb[54].mxu1 }
 0xa10   :  { %v2598_v37 = vadd.f32 %v4479_v35, %v3847_v39  ;;  %v2592_v38 = vpop.f32.mrb[43].mxu0  ;;  %v2702_v42 = vpop.f32.mrb[55].mxu1 }
 0xa11   :  { %v2593_v44 = vadd.f32 %v3847_v39, %v2592_v38  ;;  %v4826_v47 = vpack.c.bf16 %v4499_v36, %v2702_v42  ;;  %v3660_v42 = vld [vmem:[%s5909_s2 + $0x20] sm:$0xff] }
 0xa13   :  { %v4812_v25 = vpack.c.bf16 %v2598_v37, %v2593_v44  ;;  %v4482_v43 = vpop.f32.mrb[44].mxu0  ;;  %v4502_v45 = vpop.f32.mrb[56].mxu1  ;;  %v3661_v44 = vld [vmem:[%s5909_s2 + $0x28] sm:$0xff] }
 0xa14   :  { %v2608_v57 = vadd.f32 %v4482_v43, %v3847_v39  ;;  %v2602_v59 = vpop.f32.mrb[45].mxu0  ;;  %v2712_v61 = vpop.f32.mrb[57].mxu1  ;;  %v3663_v43 = vld [vmem:[%s5909_s2 + $0x38] sm:$0xff] }
 0xa15   :  { %v2603_v0 = vadd.f32 %v3847_v39, %v2602_v59  ;;  %v4829_v4 = vpack.c.bf16 %v4502_v45, %v2712_v61  ;;  %4810 = vmatpush3.bf16.xpose.msk.msra.mxu0 %vm5304_vm3, %v4808_v34  ;;  %4814 = vmatpush3.bf16.xpose.msk.msra.mxu1 %vm5304_vm3, %v4812_v25  ;;  %v3662_v25 = vld [vmem:[%s5909_s2 + $0x30] sm:$0xff] }
 0xa16   :  { %4815 = vmatprep.subr.bf16.mxu1 %v4993_v40  ;;  %4819 = vmatprep.subr.bf16.mxu0 %v4993_v40  ;;  %v4835_v45 = vpack.c.bf16 %v3663_v43, %v3662_v25 }
 0xa17   :  { %v4816_v6 = vpack.c.bf16 %v2608_v57, %v2603_v0 }
 0xa1c   :  { %4512 = vmatmul.mubr.msk.f32.vlgmr.msra.gmra.mrb[46].mxu0 %vm732_vm2, %v2485_v53  ;;  %v3881_v53 = vld [vmem:[%s5913_s6 + $0x5] ss:$0 sm:$0xff] }
 0xa1d   :  { %4818 = vmatpush3.bf16.xpose.msk.msra.mxu1 %vm5304_vm3, %v4816_v6  ;;  %4821 = vmatpush3.bf16.msra.mxu0 %v4820_v32 }
 0xa1e   :  { %4822 = vmatprep.subr.bf16.mxu0 %v4993_v40  ;;  %4825 = vmatprep.subr.bf16.mxu1 %v4993_v40 }
 0xa1f   :  { %4533 = vmatprep.mubr.msk.f32.mxu0 %vm4994_vm1, %v4995_v41 }
 0xa21   :  { %4824 = vmatpush3.bf16.msra.mxu0 %v4823_v33 }
 0xa24   :  { %4523 = vmatmul.mubr.msk.f32.vlgmr.msra.gmra.mrb[58].mxu1 %vm732_vm2, %v2490_v12 }
 0xa25   :  { %4827 = vmatpush3.bf16.msra.mxu1 %v4826_v47  ;;  %4544 = vmatprep.mubr.msk.f32.mxu1 %vm4994_vm1, %v4995_v41  ;;  %v4831_v47 = vpack.c.bf16 %v3661_v44, %v3660_v42 }
 0xa26   :  { %4828 = vmatprep.subr.bf16.mxu1 %v4993_v40 }
 0xa27   :  { %4832 = vmatprep.subr.bf16.mxu0 %v4831_v47 }
 0xa29   :  { %4830 = vmatpush3.bf16.msra.mxu1 %v4829_v4 }
 0xaef   :  { %v2802_v51 = vpop.f32.mrb[46].mxu0 }
 0xaf0   :  { %v2891_v13 = vmul.f32 0.35355338, %v2802_v51  ;;  %v4513_v15 = vpop.f32.mrb[47].mxu0  ;;  %v3882_v51 = vld [vmem:[%s5913_s6 + $0x6] ss:$0 sm:$0xff] }
 0xaf2   :  { %v2893_v49 = vadd.f32 %v5428_v62, %v2891_v13 }
 0xaf4   :  { %v2895_v16 = vsel %vm98_vm0, %v2893_v49, -inf }
 0xaf5   :  { %2896 = vmax.xlane.f32.xlu0 %v2895_v16 }
 0xaf7   :  { %v2887_v1 = vpop.f32.mrb[58].mxu1 }
 0xaf8   :  { %v2892_v5 = vmul.f32 0.35355338, %v2887_v1  ;;  %v4524_v10 = vpop.f32.mrb[59].mxu1 }
 0xaf9   :  { %v3883_v10 = vld [vmem:[%s5913_s6 + $0x7] ss:$0 sm:$0xff] }
 0xafa   :  { %v2894_v20 = vadd.f32 %v5423_v56, %v2892_v5 }
 0xafc   :  { %v2898_v26 = vsel %vm98_vm0, %v2894_v20, -inf }
 0xafd   :  { %2899 = vmax.xlane.f32.xlu1 %v2898_v26 }
 0xb82   :  { %v2897_v41 = vpop.xlane.xlu0 %2896 }
 0xb83   :  { %v2901_v27 = vsub.f32 %v2893_v49, %v2897_v41 }
 0xb85   :  { %v2903_v40 = vmul.f32 1.442695, %v2901_v27 }
 0xb87   :  { %4933 = vpow2.f32 %v2903_v40 }
 0xb8a   :  { %v2900_v28 = vpop.xlane.xlu1 %2899 }
 0xb8b   :  { %v2902_v46 = vsub.f32 %v2894_v20, %v2900_v28 }
 0xb8d   :  { %v2905_v48 = vmul.f32 1.442695, %v2902_v46 }
 0xb8f   :  { %4935 = vpow2.f32 %v2905_v48 }
 0xb91   :  { %v4934_v62 = vpop.eup %4933 }
 0xb92   :  { %v2907_v50 = vsel %vm98_vm0, %v4934_v62, 0.0 }
 0xb93   :  { %2908 = vadd.xlane.f32.xlu0 %v2907_v50 }
 0xb99   :  { %v4936_v52 = vpop.eup %4935 }
 0xb9a   :  { %v2910_v23 = vsel %vm98_vm0, %v4936_v52, 0.0 }
 0xb9b   :  { %2911 = vadd.xlane.f32.xlu1 %v2910_v23 }
 0xc20   :  { %v2909_v56 = vpop.xlane.xlu0 %2908 }
 0xc21   :  { %4937 = vrcp.f32 %v2909_v56 }
 0xc28   :  { %v2912_v30 = vpop.xlane.xlu1 %2911 }
 0xc29   :  { %4939 = vrcp.f32 %v2912_v30 }
 0xc2b   :  { %v4938_v8 = vpop.eup %4937 }
 0xc2c   :  { %v2915_v24 = vmul.f32 %v4938_v8, %v4934_v62 }
 0xc2e   :  { %4534 = vmatmul.mubr.msk.f32.vlgmr.msra.gmra.mrb[48].mxu0 %vm98_vm0, %v2915_v24 }
 0xc2f   :  { %4834 = vmatpush3.bf16.msra.mxu0 %v4831_v47 }
 0xc30   :  { %4836 = vmatprep.subr.bf16.mxu0 %v4835_v45 }
 0xc33   :  { %v4940_v14 = vpop.eup %4939  ;;  %4838 = vmatpush3.bf16.msra.mxu0 %v4835_v45 }
 0xc34   :  { %v2916_v39 = vmul.f32 %v4940_v14, %v4936_v52  ;;  %v3264_v14 = vld [vmem:[%s5911_s4] sm:$0xff] }
 0xc36   :  { %4545 = vmatmul.mubr.msk.f32.vlgmr.msra.gmra.mrb[60].mxu1 %vm98_vm0, %v2916_v39  ;;  %v3265_v39 = vld [vmem:[%s5911_s4 + $0x8] sm:$0xff] }
 0xd01   :  { %v2986_v18 = vpop.f32.mrb[48].mxu0 }
 0xd02   :  { %v3063_v54 = vadd.f32 %v2986_v18, %v5699_v55  ;;  %v4535_v58 = vpop.f32.mrb[49].mxu0  ;;  %v3266_v18 = vld [vmem:[%s5911_s4 + $0x10] sm:$0xff] }
 0xd03   :  { %v3267_v58 = vld [vmem:[%s5911_s4 + $0x18] sm:$0xff] }
 0xd04   :  { %v3065_v21 = vadd.f32 %v3063_v54, %v5071_v9  ;;  %v4839_v54 = vpack.c.bf16 %v3265_v39, %v3264_v14  ;;  %v3419_v39 = vld [vmem:[%s5912_s5 + $0x38] sm:$0xff] }
 0xd06   :  { %v5743_v19 = vadd.f32 %v3880_v60, %v3065_v21  ;;  %4840 = vmatprep.subr.bf16.mxu1 %v4839_v54 }
 0xd07   :  { %4842 = vmatpush3.bf16.msra.mxu1 %v4839_v54  ;;  %v3420_v54 = vld [vmem:[%s5912_s5 + $0x40] sm:$0xff] }
 0xd08   :  { %v3075_v32 = vsel %vm98_vm0, %v5743_v19, 0.0 }
 0xd09   :  { %v3059_v22 = vpop.f32.mrb[60].mxu1  ;;  %3076 = vadd.xlane.f32.xlu0 %v3075_v32 }
 0xd0a   :  { %v3064_v63 = vadd.f32 %v3059_v22, %v5702_v17  ;;  %v4546_v2 = vpop.f32.mrb[61].mxu1 }
 0xd0c   :  { %v3066_v29 = vadd.f32 %v3064_v63, %v5071_v9 }
 0xd0e   :  { %v5749_v55 = vadd.f32 %v3880_v60, %v3066_v29  ;;  %v4843_v60 = vpack.c.bf16 %v3267_v58, %v3266_v18  ;;  %v3421_v58 = vld [vmem:[%s5912_s5 + $0x48] sm:$0xff] }
 0xd10   :  { %v3078_v3 = vsel %vm98_vm0, %v5749_v55, 0.0  ;;  %4844 = vmatprep.subr.bf16.mxu1 %v4843_v60 }
 0xd11   :  { %3079 = vadd.xlane.f32.xlu1 %v3078_v3  ;;  %4846 = vmatpush3.bf16.msra.mxu1 %v4843_v60  ;;  %v4863_v60 = vpack.c.bf16 %v3421_v58, %v3420_v54 }
 0xd96   :  { %v3077_v31 = vpop.xlane.xlu0 %3076 }
 0xd97   :  { %v3081_v11 = vmul.f32 0.03125, %v3077_v31  ;;  %v3886_v31 = vld [vmem:[%s5913_s6 + $0x8] ss:$0 sm:$0xff] }
 0xd99   :  { %v3083_v33 = vsub.f32 %v5743_v19, %v3081_v11 }
 0xd9b   :  { %v3085_v34 = vmul.f32 %v3083_v33, %v3083_v33 }
 0xd9d   :  { %v3087_v35 = vsel %vm98_vm0, %v3085_v34, 0.0  ;;  %v3887_v34 = vld [vmem:[%s5913_s6 + $0x9] ss:$0 sm:$0xff] }
 0xd9e   :  { %v3080_v36 = vpop.xlane.xlu1 %3079  ;;  %3088 = vadd.xlane.f32.xlu0 %v3087_v35 }
 0xd9f   :  { %v3082_v37 = vmul.f32 0.03125, %v3080_v36 }
 0xda1   :  { %v3084_v17 = vsub.f32 %v5749_v55, %v3082_v37 }
 0xda3   :  { %v3086_v38 = vmul.f32 %v3084_v17, %v3084_v17 }
 0xda5   :  { %v3090_v9 = vsel %vm98_vm0, %v3086_v38, 0.0 }
 0xda6   :  { %3091 = vadd.xlane.f32.xlu1 %v3090_v9 }
 0xe2b   :  { %v3089_v57 = vpop.xlane.xlu0 %3088 }
 0xe2c   :  { %v3093_v59 = vmul.f32 0.03125, %v3089_v57 }
 0xe2e   :  { %v3095_v61 = vadd.f32 1e-05, %v3093_v59 }
 0xe30   :  { %4941 = vrsqrt.f32 %v3095_v61 }
 0xe33   :  { %v3092_v0 = vpop.xlane.xlu1 %3091 }
 0xe34   :  { %v3094_v4 = vmul.f32 0.03125, %v3092_v0 }
 0xe36   :  { %v3096_v7 = vadd.f32 1e-05, %v3094_v4 }
 0xe38   :  { %4943 = vrsqrt.f32 %v3096_v7 }
 0xe3a   :  { %v4942_v6 = vpop.eup %4941 }
 0xe3b   :  { %v3099_v12 = vmul.f32 %v4942_v6, %v3083_v33 }
 0xe3d   :  { %v3107_v13 = vmul.f32 %v3881_v53, %v3099_v12 }
 0xe3f   :  { %v3115_v15 = vadd.f32 %v3882_v51, %v3107_v13 }
 0xe41   :  { %4555 = vmatprep.mubr.msk.f32.mxu0 %vm98_vm0, %v3115_v15  ;;  %v3888_v15 = vld [vmem:[%s5914_s7] ss:$0 sm:$0xff] }
 0xe42   :  { %v4944_v49 = vpop.eup %4943 }
 0xe43   :  { %v3100_v16 = vmul.f32 %v4944_v49, %v3084_v17 }
 0xe45   :  { %v3108_v1 = vmul.f32 %v3881_v53, %v3100_v16 }
 0xe47   :  { %v3116_v5 = vadd.f32 %v3882_v51, %v3108_v1 }
 0xe49   :  { %4556 = vmatmul.mubr.msk.f32.vlgmr.msra.gmra.mrb[50].mxu0 %vm98_vm0, %v3116_v5 }
 0xf1c   :  { %v4557_v20 = vpop.f32.mrb[50].mxu0 }
 0xf1d   :  { %v3201_v26 = vadd.f32 %v4557_v20, %v3883_v10  ;;  %v3195_v41 = vpop.f32.mrb[51].mxu0 }
 0xf1e   :  { %v3196_v27 = vadd.f32 %v3883_v10, %v3195_v41 }
 0xf1f   :  { %v3207_v40 = vsel %vm98_vm0, %v3201_v26, 0.0 }
 0xf20   :  { %3208 = vadd.xlane.f32.xlu1 %v3207_v40  ;;  %v3204_v28 = vsel %vm98_vm0, %v3196_v27, 0.0 }
 0xf21   :  { %3205 = vadd.xlane.f32.xlu0 %v3204_v28 }
 0xfad   :  { %v3209_v46 = vpop.xlane.xlu1 %3208 }
 0xfae   :  { %v3211_v48 = vmul.f32 0.03125, %v3209_v46  ;;  %v3206_v62 = vpop.xlane.xlu0 %3205 }
 0xfaf   :  { %v3210_v50 = vmul.f32 0.03125, %v3206_v62  ;;  %v3413_v62 = vld [vmem:[%s5912_s5 + $0x8] sm:$0xff] }
 0xfb0   :  { %v3213_v52 = vsub.f32 %v3201_v26, %v3211_v48  ;;  %v3412_v48 = vld [vmem:[%s5912_s5] sm:$0xff] }
 0xfb1   :  { %v3212_v23 = vsub.f32 %v3196_v27, %v3210_v50  ;;  %v4847_v50 = vpack.c.bf16 %v3413_v62, %v3412_v48 }
 0xfb2   :  { %v3215_v56 = vmul.f32 %v3213_v52, %v3213_v52 }
 0xfb3   :  { %v3214_v30 = vmul.f32 %v3212_v23, %v3212_v23  ;;  %4848 = vmatprep.subr.bf16.mxu0 %v4847_v50 }
 0xfb4   :  { %v3219_v8 = vsel %vm98_vm0, %v3215_v56, 0.0  ;;  %4850 = vmatpush3.bf16.msra.mxu0 %v4847_v50 }
 0xfb5   :  { %3220 = vadd.xlane.f32.xlu1 %v3219_v8  ;;  %v3216_v24 = vsel %vm98_vm0, %v3214_v30, 0.0  ;;  %v3416_v30 = vld [vmem:[%s5912_s5 + $0x20] sm:$0xff]  ;;  %v3417_v8 = vld [vmem:[%s5912_s5 + $0x28] sm:$0xff] }
 0xfb6   :  { %3217 = vadd.xlane.f32.xlu0 %v3216_v24  ;;  %v3418_v24 = vld [vmem:[%s5912_s5 + $0x30] sm:$0xff]  ;;  %v4855_v14 = vpack.c.bf16 %v3417_v8, %v3416_v30 }
 0xfb7   :  { %v4859_v18 = vpack.c.bf16 %v3419_v39, %v3418_v24 }
0x1042   :  { %v3221_v21 = vpop.xlane.xlu1 %3220 }
0x1043   :  { %v3223_v32 = vmul.f32 0.03125, %v3221_v21  ;;  %v3218_v22 = vpop.xlane.xlu0 %3217  ;;  %v3422_v21 = vld [vmem:[%s5912_s5 + $0x50] sm:$0xff] }
0x1044   :  { %v3222_v63 = vmul.f32 0.03125, %v3218_v22 }
0x1045   :  { %v3225_v2 = vadd.f32 1e-05, %v3223_v32  ;;  %v3423_v32 = vld [vmem:[%s5912_s5 + $0x58] sm:$0xff] }
0x1046   :  { %v3224_v29 = vadd.f32 1e-05, %v3222_v63  ;;  %v4867_v22 = vpack.c.bf16 %v3423_v32, %v3422_v21  ;;  %v3424_v63 = vld [vmem:[%s5912_s5 + $0x60] sm:$0xff]  ;;  %v3666_v32 = vld [vmem:[%s5909_s2 + $0x50] sm:$0xff] }
0x1047   :  { %4945 = vrsqrt.f32 %v3225_v2  ;;  %v3425_v2 = vld [vmem:[%s5912_s5 + $0x68] sm:$0xff] }
0x1048   :  { %4947 = vrsqrt.f32 %v3224_v29  ;;  %v4871_v29 = vpack.c.bf16 %v3425_v2, %v3424_v63 }
0x1051   :  { %v4946_v3 = vpop.eup %4945 }
0x1052   :  { %v4948_v11 = vpop.eup %4947  ;;  %v3229_v33 = vmul.f32 %v4946_v3, %v3213_v52  ;;  %v3414_v52 = vld [vmem:[%s5912_s5 + $0x10] sm:$0xff] }
0x1053   :  { %v3228_v35 = vmul.f32 %v4948_v11, %v3212_v23  ;;  %v3415_v23 = vld [vmem:[%s5912_s5 + $0x18] sm:$0xff]  ;;  %v3426_v3 = vld [vmem:[%s5912_s5 + $0x70] sm:$0xff] }
0x1054   :  { %v3237_v36 = vmul.f32 %v3886_v31, %v3229_v33  ;;  %v4851_v56 = vpack.c.bf16 %v3415_v23, %v3414_v52 }
0x1055   :  { %v3236_v37 = vmul.f32 %v3886_v31, %v3228_v35  ;;  %v3427_v31 = vld [vmem:[%s5912_s5 + $0x78] sm:$0xff] }
0x1056   :  { %v3245_v17 = vadd.f32 %v3887_v34, %v3237_v36  ;;  %4852 = vmatprep.subr.bf16.mxu0 %v4851_v56  ;;  %v4875_v11 = vpack.c.bf16 %v3427_v31, %v3426_v3 }
0x1057   :  { %v3244_v38 = vadd.f32 %v3887_v34, %v3236_v37  ;;  %4854 = vmatpush3.bf16.msra.mxu0 %v4851_v56 }
0x1058   :  { %v3249_v9 = vmul.f32 0.044715, %v3245_v17  ;;  %v3247_v12 = vmul.f32 0.5, %v3245_v17  ;;  %4856 = vmatprep.subr.bf16.mxu0 %v4855_v14 }
0x1059   :  { %v3248_v42 = vmul.f32 0.044715, %v3244_v38  ;;  %v3246_v6 = vmul.f32 0.5, %v3244_v38 }
0x105a   :  { %v3251_v44 = vmul.f32 %v3249_v9, %v3245_v17  ;;  %v3891_v9 = vld [vmem:[%s5914_s7 + $0x1] ss:$0 sm:$0xff] }
0x105b   :  { %v3250_v47 = vmul.f32 %v3248_v42, %v3244_v38  ;;  %4858 = vmatpush3.bf16.msra.mxu0 %v4855_v14 }
0x105c   :  { %v3253_v25 = vmul.f32 %v3251_v44, %v3245_v17  ;;  %4860 = vmatprep.subr.bf16.mxu0 %v4859_v18 }
0x105d   :  { %v3252_v43 = vmul.f32 %v3250_v47, %v3244_v38  ;;  %v3892_v47 = vld [vmem:[%s5914_s7 + $0x2] ss:$0 sm:$0xff] }
0x105e   :  { %v3255_v45 = vadd.f32 %v3253_v25, %v3245_v17 }
0x105f   :  { %v3254_v57 = vadd.f32 %v3252_v43, %v3244_v38  ;;  %4862 = vmatpush3.bf16.msra.mxu0 %v4859_v18 }
0x1060   :  { %v3257_v59 = vmul.f32 0.7978846, %v3255_v45  ;;  %4864 = vmatprep.subr.bf16.mxu0 %v4863_v60 }
0x1061   :  { %v3256_v61 = vmul.f32 0.7978846, %v3254_v57 }
0x1062   :  { %4949 = vtanh.f32 %v3257_v59 }
0x1063   :  { %4951 = vtanh.f32 %v3256_v61  ;;  %4866 = vmatpush3.bf16.msra.mxu0 %v4863_v60  ;;  %v3665_v60 = vld [vmem:[%s5909_s2 + $0x48] sm:$0xff] }
0x1064   :  { %4868 = vmatprep.subr.bf16.mxu0 %v4867_v22 }
0x1067   :  { %4870 = vmatpush3.bf16.msra.mxu0 %v4867_v22  ;;  %v3667_v22 = vld [vmem:[%s5909_s2 + $0x58] sm:$0xff] }
0x1068   :  { %4872 = vmatprep.subr.bf16.mxu0 %v4871_v29  ;;  %v4883_v63 = vpack.c.bf16 %v3667_v22, %v3666_v32 }
0x106b   :  { %4874 = vmatpush3.bf16.msra.mxu0 %v4871_v29 }
0x106c   :  { %v4950_v0 = vpop.eup %4949  ;;  %4876 = vmatprep.subr.bf16.mxu0 %v4875_v11 }
0x106d   :  { %v4952_v4 = vpop.eup %4951  ;;  %v3261_v7 = vadd.f32 1.0, %v4950_v0 }
0x106e   :  { %v3260_v53 = vadd.f32 1.0, %v4952_v4 }
0x106f   :  { %v3263_v13 = vmul.f32 %v3261_v7, %v3247_v12  ;;  %4878 = vmatpush3.bf16.msra.mxu0 %v4875_v11 }
0x1070   :  { %v3262_v51 = vmul.f32 %v3260_v53, %v3246_v6 }
0x1072   :  { %4566 = vmatprep.mubr.msk.f32.mxu1 %vm98_vm0, %v3262_v51 }
0x1073   :  { %4567 = vmatmul.mubr.msk.f32.vlgmr.msra.gmra.mrb[62].mxu1 %vm98_vm0, %v3263_v13 }
0x1146   :  { %v4568_v49 = vpop.f32.mrb[62].mxu1 }
0x1147   :  { %v3352_v16 = vadd.f32 %v4568_v49, %v3888_v15  ;;  %v3346_v1 = vpop.f32.mrb[63].mxu1 }
0x1148   :  { %v3347_v5 = vadd.f32 %v3888_v15, %v3346_v1 }
0x1149   :  { %3357 = vadd.xlane.f32.xlu1 %v3352_v16 }
0x114a   :  { %3355 = vadd.xlane.f32.xlu0 %v3347_v5 }
0x11d6   :  { %v3358_v10 = vpop.xlane.xlu1 %3357 }
0x11d7   :  { %v3361_v20 = vmul.f32 0.0078125, %v3358_v10  ;;  %v3356_v26 = vpop.xlane.xlu0 %3355 }
0x11d8   :  { %v3360_v41 = vmul.f32 0.0078125, %v3356_v26 }
0x11d9   :  { %v3363_v27 = vsub.f32 %v3352_v16, %v3361_v20 }
0x11da   :  { %v3362_v40 = vsub.f32 %v3347_v5, %v3360_v41 }
0x11db   :  { %v3365_v28 = vmul.f32 %v3363_v27, %v3363_v27 }
0x11dc   :  { %v3364_v46 = vmul.f32 %v3362_v40, %v3362_v40 }
0x11dd   :  { %3368 = vadd.xlane.f32.xlu1 %v3365_v28 }
0x11de   :  { %3366 = vadd.xlane.f32.xlu0 %v3364_v46 }
0x126a   :  { %v3369_v33 = vpop.xlane.xlu1 %3368 }
0x126b   :  { %v3371_v34 = vmul.f32 0.0078125, %v3369_v33  ;;  %v3367_v35 = vpop.xlane.xlu0 %3366 }
0x126c   :  { %v3370_v36 = vmul.f32 0.0078125, %v3367_v35  ;;  %v3894_v35 = vld [vmem:[%s5913_s6 + $0xb] ss:$0 sm:$0xff] }
0x126d   :  { %v3373_v37 = vadd.f32 1e-05, %v3371_v34 }
0x126e   :  { %v3372_v17 = vadd.f32 1e-05, %v3370_v36 }
0x126f   :  { %4953 = vrsqrt.f32 %v3373_v37 }
0x1270   :  { %4955 = vrsqrt.f32 %v3372_v17 }
0x1279   :  { %v4954_v38 = vpop.eup %4953 }
0x127a   :  { %v4956_v42 = vpop.eup %4955  ;;  %v3377_v44 = vmul.f32 %v4954_v38, %v3363_v27  ;;  %v3893_v27 = vld [vmem:[%s5913_s6 + $0xa] ss:$0 sm:$0xff]  ;;  %v3895_v38 = vld [vmem:[%s5913_s6 + $0xc] ss:$0 sm:$0xff] }
0x127b   :  { %v3376_v25 = vmul.f32 %v4956_v42, %v3362_v40 }
0x127c   :  { %v3385_v43 = vmul.f32 %v3891_v9, %v3377_v44 }
0x127d   :  { %v3384_v45 = vmul.f32 %v3891_v9, %v3376_v25  ;;  %v3896_v25 = vld [vmem:[%s5913_s6 + $0xd] ss:$0 sm:$0xff] }
0x127e   :  { %v3393_v57 = vadd.f32 %v3892_v47, %v3385_v43 }
0x127f   :  { %v3392_v59 = vadd.f32 %v3892_v47, %v3384_v45 }
0x1280   :  { %v3397_v61 = vmul.f32 0.044715, %v3393_v57  ;;  %v3395_v20 = vmul.f32 0.5, %v3393_v57 }
0x1281   :  { %v3396_v0 = vmul.f32 0.044715, %v3392_v59  ;;  %v3394_v5 = vmul.f32 0.5, %v3392_v59 }
0x1282   :  { %v3399_v4 = vmul.f32 %v3397_v61, %v3393_v57 }
0x1283   :  { %v3398_v7 = vmul.f32 %v3396_v0, %v3392_v59 }
0x1284   :  { %v3401_v6 = vmul.f32 %v3399_v4, %v3393_v57 }
0x1285   :  { %v3400_v53 = vmul.f32 %v3398_v7, %v3392_v59 }
0x1286   :  { %v3403_v12 = vadd.f32 %v3401_v6, %v3393_v57 }
0x1287   :  { %v3402_v51 = vadd.f32 %v3400_v53, %v3392_v59 }
0x1288   :  { %v3405_v13 = vmul.f32 0.7978846, %v3403_v12 }
0x1289   :  { %v3404_v15 = vmul.f32 0.7978846, %v3402_v51 }
0x128a   :  { %4957 = vtanh.f32 %v3405_v13 }
0x128b   :  { %4959 = vtanh.f32 %v3404_v15 }
0x1294   :  { %v4958_v49 = vpop.eup %4957 }
0x1295   :  { %v4960_v16 = vpop.eup %4959  ;;  %v3409_v1 = vadd.f32 1.0, %v4958_v49 }
0x1296   :  { %v3408_v10 = vadd.f32 1.0, %v4960_v16 }
0x1297   :  { %v3411_v41 = vmul.f32 %v3409_v1, %v3395_v20 }
0x1298   :  { %v3410_v26 = vmul.f32 %v3408_v10, %v3394_v5 }
0x129a   :  { %4601 = vmatprep.mubr.f32.mxu0 %v3410_v26 }
0x129b   :  { %4602 = vmatmul.mubr.f32.vlgmr.msra.gmra.mrb[52].mxu0 %v3411_v41 }
0x136e   :  { %v4603_v40 = vpop.f32.mrb[52].mxu0 }
0x136f   :  { %v3506_v28 = vadd.f32 %v4603_v40, %v3893_v27  ;;  %v3500_v46 = vpop.f32.mrb[53].mxu0 }
0x1370   :  { %v3501_v48 = vadd.f32 %v3893_v27, %v3500_v46 }
0x1371   :  { %v3510_v62 = vadd.f32 %v3506_v28, %v5749_v55 }
0x1372   :  { %v3509_v50 = vadd.f32 %v3501_v48, %v5743_v19  ;;  %v3664_v19 = vld [vmem:[%s5909_s2 + $0x40] sm:$0xff] }
0x1373   :  { %v3514_v52 = vsel %vm98_vm0, %v3510_v62, 0.0  ;;  %v4879_v21 = vpack.c.bf16 %v3665_v60, %v3664_v19 }
0x1374   :  { %3515 = vadd.xlane.f32.xlu1 %v3514_v52  ;;  %v3511_v23 = vsel %vm98_vm0, %v3509_v50, 0.0 }
0x1375   :  { %3512 = vadd.xlane.f32.xlu0 %v3511_v23  ;;  %4880 = vmatprep.subr.bf16.mxu1 %v4879_v21 }
0x1376   :  { %4882 = vmatpush3.bf16.msra.mxu1 %v4879_v21 }
0x1377   :  { %4884 = vmatprep.subr.bf16.mxu1 %v4883_v63 }
0x137a   :  { %4886 = vmatpush3.bf16.msra.mxu1 %v4883_v63 }
0x1401   :  { %v3516_v56 = vpop.xlane.xlu1 %3515 }
0x1402   :  { %v3518_v30 = vmul.f32 0.03125, %v3516_v56  ;;  %v3513_v8 = vpop.xlane.xlu0 %3512 }
0x1403   :  { %v3517_v24 = vmul.f32 0.03125, %v3513_v8 }
0x1404   :  { %v3520_v14 = vsub.f32 %v3510_v62, %v3518_v30 }
0x1405   :  { %v3519_v39 = vsub.f32 %v3509_v50, %v3517_v24 }
0x1406   :  { %v3522_v18 = vmul.f32 %v3520_v14, %v3520_v14 }
0x1407   :  { %v3521_v54 = vmul.f32 %v3519_v39, %v3519_v39 }
0x1408   :  { %v3526_v58 = vsel %vm98_vm0, %v3522_v18, 0.0 }
0x1409   :  { %3527 = vadd.xlane.f32.xlu1 %v3526_v58  ;;  %v3523_v55 = vsel %vm98_vm0, %v3521_v54, 0.0 }
0x140a   :  { %3524 = vadd.xlane.f32.xlu0 %v3523_v55 }
0x1496   :  { %v3528_v2 = vpop.xlane.xlu1 %3527 }
0x1497   :  { %v3530_v29 = vmul.f32 0.03125, %v3528_v2  ;;  %v3525_v3 = vpop.xlane.xlu0 %3524 }
0x1498   :  { %v3529_v31 = vmul.f32 0.03125, %v3525_v3 }
0x1499   :  { %v3532_v11 = vadd.f32 1e-05, %v3530_v29 }
0x149a   :  { %v3531_v33 = vadd.f32 1e-05, %v3529_v31 }
0x149b   :  { %4961 = vrsqrt.f32 %v3532_v11 }
0x149c   :  { %4963 = vrsqrt.f32 %v3531_v33 }
0x14a5   :  { %v4962_v34 = vpop.eup %4961 }
0x14a6   :  { %v4964_v36 = vpop.eup %4963  ;;  %v3536_v37 = vmul.f32 %v4962_v34, %v3520_v14 }
0x14a7   :  { %v3535_v17 = vmul.f32 %v4964_v36, %v3519_v39 }
0x14a8   :  { %v3544_v9 = vmul.f32 %v3894_v35, %v3536_v37 }
0x14a9   :  { %v3543_v42 = vmul.f32 %v3894_v35, %v3535_v17 }
0x14aa   :  { %v3552_v47 = vadd.f32 %v3895_v38, %v3544_v9 }
0x14ab   :  { %v3551_v44 = vadd.f32 %v3895_v38, %v3543_v42 }
0x14ad   :  { %4612 = vmatprep.mubr.msk.f32.mxu1 %vm98_vm0, %v3551_v44 }
0x14ae   :  { %4613 = vmatmul.mubr.msk.f32.vlgmr.msra.gmra.mrb[64].mxu1 %vm98_vm0, %v3552_v47 }
0x1581   :  { %v4614_v43 = vpop.f32.mrb[64].mxu1 }
0x1582   :  { %v3637_v45 = vadd.f32 %v4614_v43, %v3896_v25  ;;  %v3631_v57 = vpop.f32.mrb[65].mxu1 }
0x1583   :  { %v3632_v59 = vadd.f32 %v3896_v25, %v3631_v57 }
0x1584   :  { %4965 = vtanh.f32 %v3637_v45 }
0x1585   :  { %4967 = vtanh.f32 %v3632_v59 }
0x158e   :  { %v4966_v61 = vpop.eup %4965 }
0x158f   :  { %v4968_v0 = vpop.eup %4967  ;;  %3643 = vst.msk [vmem:[#allocation2 + $0x8] sm:$0xff] %vm98_vm0, %v4966_v61 }
0x1590   :  { %3642 = vst.msk [vmem:[#allocation2] sm:$0xff] %vm98_vm0, %v4968_v0 }
0x1591   :  { %4980 = shalt.err (!%p4977_p4)
}
0x1592   :  { %s4981_s12 = scalar_lea.hbm %s5916_s9, 256 }
0x1593   :  { %p4982_p5 = scmp.ne.s32.totalorder %s5916_s9, %s4981_s12  ;;  %p4985_p6 = scmp.lt.u32.totalorder %s4981_s12, %s5916_s9 }
0x1595   :  { %p4987_p7 = pnand %p4985_p6, %p4982_p5 }
0x1597   :  { %4990 = shalt.err (!%p4987_p7)
}
0x1598   :  { %s4997_s17 = smov 128   ;;  %s4998_s18 = smov 8  }
0x1599   :  { %3655 = dma.vmem_to_hbm [thread:$0]  %s3650_s30, 256, %s5916_s9, [#allocation3], %s4997_s17, %s4997_s17, %s4998_s18  }
0x159a   :  { %4991 = dma.done.wait [#allocation3], 256  }
0x159b   :  { %4992 = vsyncadd [#allocation3], 4294967040 }
0x159c   :  { %3659 = vsyncpa [#allocation3], 1 }

</bundles_post_ra>
